<compile_context>
chip_gen: v5e
topology: v5e:2x2
jax: 0.10.0
libtpu: 0.0.40
codegen_flags: <defaults>
</compile_context>

<pallas_src>
import functools
import math

import jax
import jax.numpy as jnp
from jax import lax
from jax.experimental import pallas as pl
from jax.experimental.pallas import tpu as pltpu

LN_EPS = 1e-5                      # torch.nn.LayerNorm default


def _tpu_defaults():
    """(row_tile_target, vmem_limit_bytes) chosen per TPU generation."""
    try:
        info = pltpu.get_tpu_info()
        vmem_cap = int(getattr(info, "vmem_capacity_bytes", 0))
    except Exception:
        return 512, 32 * 1024 * 1024          # conservative fallback
    if vmem_cap >= 100 * 1024 * 1024:          # v5e / v6e (128 MiB VMEM)
        return 1024, 64 * 1024 * 1024
    return 512, 40 * 1024 * 1024               # v7x (64 MiB VMEM)


_ROW_TILE_TARGET, _VMEM_LIMIT = _tpu_defaults()

_MOSAIC_1D = pltpu.CompilerParams(
    dimension_semantics=("parallel",),
    vmem_limit_bytes=_VMEM_LIMIT,
)


def _round_up(x, m):
    return ((x + m - 1) // m) * m


def _row_plan(m):
    """Pick (tile, padded_rows): tile % 8 == 0 and tile divides padded_rows."""
    if m <= _ROW_TILE_TARGET:
        t = _round_up(max(m, 8), 8)
        return t, t
    t = _ROW_TILE_TARGET
    return t, _round_up(m, t)


def _pad_rows(x, mp):
    m = x.shape[0]
    if m == mp:
        return x
    return jnp.pad(x, ((0, mp - m), (0, 0)))


# ----------------------------- Pallas kernels ------------------------------

def _self_attn_ln_kernel(tgt_ref, pos_ref, wqk_ref, bqk_ref, wv_ref, bv_ref,
                         wo_ref, bo_ref, g_ref, b_ref, o_ref, *, n_heads, eps):
    """Fused self-attention block for one batch element.

    q = k = tgt+pos, v = tgt; head-batched SDPA; out_proj; +residual; LayerNorm2.
    tgt_ref/pos_ref/o_ref: (Lq, D). Weights are bf16 and VMEM-resident.
    """
    x = tgt_ref[...].astype(jnp.float32)
    xp = x + pos_ref[...].astype(jnp.float32)
    Lq, D = x.shape
    hd = D // n_heads
    scale = 1.0 / math.sqrt(hd)

    qk = jnp.dot(xp.astype(jnp.bfloat16), wqk_ref[...],
                 preferred_element_type=jnp.float32) + bqk_ref[...]
    v = jnp.dot(x.astype(jnp.bfloat16), wv_ref[...],
                preferred_element_type=jnp.float32) + bv_ref[...]

    # Head-batched SDPA (no per-head lane-slice loop / lane concat).
    qh = jnp.transpose((qk[:, :D] * scale).reshape(Lq, n_heads, hd), (1, 0, 2))
    kh = jnp.transpose(qk[:, D:].reshape(Lq, n_heads, hd), (1, 0, 2))
    vh = jnp.transpose(v.reshape(Lq, n_heads, hd), (1, 0, 2))

    s = jnp.einsum('hqd,hkd->hqk', qh.astype(jnp.bfloat16),
                   kh.astype(jnp.bfloat16),
                   preferred_element_type=jnp.float32)          # (H, Lq, Lq)
    m = jnp.max(s, axis=-1, keepdims=True)
    e = jnp.exp(s - m)
    p = e * pl.reciprocal(jnp.sum(e, axis=-1, keepdims=True), approx=True)
    ctx = jnp.einsum('hqk,hkd->hqd', p.astype(jnp.bfloat16),
                     vh.astype(jnp.bfloat16),
                     preferred_element_type=jnp.float32)        # (H, Lq, hd)
    attn = jnp.transpose(ctx, (1, 0, 2)).reshape(Lq, D)

    t2 = jnp.dot(attn.astype(jnp.bfloat16), wo_ref[...],
                 preferred_element_type=jnp.float32) + bo_ref[...]
    y = x + t2                                                  # residual
    mu = jnp.mean(y, axis=-1, keepdims=True)
    var = jnp.mean((y - mu) ** 2, axis=-1, keepdims=True)
    o_ref[...] = ((y - mu) * lax.rsqrt(var + eps) * g_ref[...]
                  + b_ref[...]).astype(o_ref.dtype)


def _linear_kernel(x_ref, w_ref, b_ref, o_ref):
    acc = jnp.dot(x_ref[...].astype(jnp.bfloat16), w_ref[...],
                  preferred_element_type=jnp.float32) + b_ref[...]
    o_ref[...] = acc.astype(o_ref.dtype)


def _samp_proj_kernel(tgt_ref, pos_ref, w_ref, b_ref, off_ref, aw_ref, *,
                      n_heads, lp):
    """Fused (tgt+pos) + sampling_offsets + attention_weights projection.

    One matmul against the concatenated (D, 3*H*L*P) weight; the per-head
    softmax over the L*P attention-weight lanes runs once on a (rows, H, L*P)
    view in the epilogue (no per-head lane-slice loop).
    """
    x = tgt_ref[...].astype(jnp.float32) + pos_ref[...].astype(jnp.float32)
    t = jnp.dot(x.astype(jnp.bfloat16), w_ref[...],
                preferred_element_type=jnp.float32) + b_ref[...]
    n_off = off_ref.shape[-1]                     # 2 * H * L * P
    off_ref[...] = t[:, :n_off].astype(off_ref.dtype)
    rows = t.shape[0]
    logits = t[:, n_off:].reshape(rows, n_heads, lp)
    m = jnp.max(logits, axis=-1, keepdims=True)
    e = jnp.exp(logits - m)
    p = e * pl.reciprocal(jnp.sum(e, axis=-1, keepdims=True), approx=True)
    aw_ref[...] = p.reshape(rows, n_heads * lp).astype(aw_ref.dtype)


def _proj_res_ln_kernel(x_ref, r_ref, w_ref, b_ref, g_ref, bb_ref, o_ref, *, eps):
    t = jnp.dot(x_ref[...].astype(jnp.bfloat16), w_ref[...],
                preferred_element_type=jnp.float32) + b_ref[...]
    y = r_ref[...].astype(jnp.float32) + t
    mu = jnp.mean(y, axis=-1, keepdims=True)
    var = jnp.mean((y - mu) ** 2, axis=-1, keepdims=True)
    o_ref[...] = ((y - mu) * lax.rsqrt(var + eps) * g_ref[...]
                  + bb_ref[...]).astype(o_ref.dtype)


def _ffn_kernel(x_ref, w1_ref, b1_ref, w2_ref, b2_ref, g_ref, b_ref, o_ref, *, eps):
    # fused: linear1 -> relu -> linear2 -> residual -> layernorm3
    x = x_ref[...].astype(jnp.float32)
    h = jnp.dot(x.astype(jnp.bfloat16), w1_ref[...],
                preferred_element_type=jnp.float32) + b1_ref[...]
    h = jnp.maximum(h, 0.0)
    t2 = jnp.dot(h.astype(jnp.bfloat16), w2_ref[...],
                 preferred_element_type=jnp.float32) + b2_ref[...]
    y = x + t2
    mu = jnp.mean(y, axis=-1, keepdims=True)
    var = jnp.mean((y - mu) ** 2, axis=-1, keepdims=True)
    o_ref[...] = ((y - mu) * lax.rsqrt(var + eps) * g_ref[...]
                  + b_ref[...]).astype(o_ref.dtype)


# ------------------------------ kernel wrappers -----------------------------

def self_attention_block(tgt, query_pos, sa, gamma, beta, n_heads):
    """Self-attn + residual + LayerNorm2 in a single kernel, grid over batch."""
    # TODO(synk): query_attn_mask not implemented (assumed None).
    # TODO(synk): on v7x (2 TCs) add a second parallel axis over Lq tiles so
    # batch=1 inference keeps both cores busy.
    N, Lq, D = tgt.shape
    hd = D // n_heads
    kern = functools.partial(_self_attn_ln_kernel, n_heads=n_heads, eps=LN_EPS)
    row3 = lambda b: (b, 0, 0)
    full2 = lambda b: (0, 0)
    cost = pl.CostEstimate(
        flops=N * (2 * Lq * D * 3 * D + 4 * n_heads * Lq * Lq * hd + 2 * Lq * D * D),
        transcendentals=N * n_heads * Lq * Lq,
        bytes_accessed=3 * N * Lq * D * 4 + 4 * D * D * 2)
    return pl.pallas_call(
        kern,
        out_shape=jax.ShapeDtypeStruct((N, Lq, D), jnp.float32),
        grid=(N,),
        in_specs=[
            pl.BlockSpec((None, Lq, D), row3),
            pl.BlockSpec((None, Lq, D), row3),
            pl.BlockSpec((D, 2 * D), full2),
            pl.BlockSpec((1, 2 * D), full2),
            pl.BlockSpec((D, D), full2),
            pl.BlockSpec((1, D), full2),
            pl.BlockSpec((D, D), full2),
            pl.BlockSpec((1, D), full2),
            pl.BlockSpec((1, D), full2),
            pl.BlockSpec((1, D), full2),
        ],
        out_specs=pl.BlockSpec((None, Lq, D), row3),
        compiler_params=_MOSAIC_1D,
        cost_estimate=cost,
    )(tgt, query_pos, sa['wqk'], sa['bqk'], sa['wv'], sa['bv'],
      sa['wo'], sa['bo'], gamma, beta)


def linear_rows(x, w_t, b, out_dtype=jnp.float32):
    """Row-tiled linear. x: (M, Din), w_t: (Din, Dout) bf16, b: (1, Dout)."""
    M, Din = x.shape
    Dout = w_t.shape[1]
    t, Mp = _row_plan(M)
    xp = _pad_rows(x, Mp)
    out_bytes = 2 if out_dtype == jnp.bfloat16 else 4
    cost = pl.CostEstimate(
        flops=2 * Mp * Din * Dout, transcendentals=0,
        bytes_accessed=Mp * Din * 4 + Din * Dout * 2 + Mp * Dout * out_bytes)
    out = pl.pallas_call(
        _linear_kernel,
        out_shape=jax.ShapeDtypeStruct((Mp, Dout), out_dtype),
        grid=(Mp // t,),
        in_specs=[pl.BlockSpec((t, Din), lambda i: (i, 0)),
                  pl.BlockSpec((Din, Dout), lambda i: (0, 0)),
                  pl.BlockSpec((1, Dout), lambda i: (0, 0))],
        out_specs=pl.BlockSpec((t, Dout), lambda i: (i, 0)),
        compiler_params=_MOSAIC_1D,
        cost_estimate=cost,
    )(xp, w_t, b)
    return out[:M] if Mp != M else out


def sampling_projection(tgt2, pos2, ca, n_heads, n_levels, n_points):
    """Fused (tgt+pos) + offsets + attention-weight projection + softmax."""
    M, D = tgt2.shape
    hlp = n_heads * n_levels * n_points
    t, Mp = _row_plan(M)
    tgt_p = _pad_rows(tgt2, Mp)
    pos_p = _pad_rows(pos2, Mp)
    kern = functools.partial(_samp_proj_kernel, n_heads=n_heads,
                             lp=n_levels * n_points)
    cost = pl.CostEstimate(
        flops=2 * Mp * D * 3 * hlp, transcendentals=Mp * hlp,
        bytes_accessed=2 * Mp * D * 4 + D * 3 * hlp * 2 + Mp * 3 * hlp * 4)
    off, aw = pl.pallas_call(
        kern,
        out_shape=(jax.ShapeDtypeStruct((Mp, 2 * hlp), jnp.float32),
                   jax.ShapeDtypeStruct((Mp, hlp), jnp.float32)),
        grid=(Mp // t,),
        in_specs=[pl.BlockSpec((t, D), lambda i: (i, 0)),
                  pl.BlockSpec((t, D), lambda i: (i, 0)),
                  pl.BlockSpec((D, 3 * hlp), lambda i: (0, 0)),
                  pl.BlockSpec((1, 3 * hlp), lambda i: (0, 0))],
        out_specs=(pl.BlockSpec((t, 2 * hlp), lambda i: (i, 0)),
                   pl.BlockSpec((t, hlp), lambda i: (i, 0))),
        compiler_params=_MOSAIC_1D,
        cost_estimate=cost,
    )(tgt_p, pos_p, ca['samp_wT'], ca['samp_b'])
    if Mp != M:
        off, aw = off[:M], aw[:M]
    return off, aw


def proj_res_ln(x, res, w_t, b, gamma, beta):
    """Row-tiled output projection + residual + LayerNorm."""
    M, D = x.shape
    t, Mp = _row_plan(M)
    xp = _pad_rows(x, Mp)
    rp = _pad_rows(res, Mp)
    cost = pl.CostEstimate(
        flops=2 * Mp * D * D, transcendentals=0,
        bytes_accessed=Mp * D * (2 + 4 + 4) + D * D * 2)
    out = pl.pallas_call(
        functools.partial(_proj_res_ln_kernel, eps=LN_EPS),
        out_shape=jax.ShapeDtypeStruct((Mp, D), jnp.float32),
        grid=(Mp // t,),
        in_specs=[pl.BlockSpec((t, D), lambda i: (i, 0)),
                  pl.BlockSpec((t, D), lambda i: (i, 0)),
                  pl.BlockSpec((D, D), lambda i: (0, 0)),
                  pl.BlockSpec((1, D), lambda i: (0, 0)),
                  pl.BlockSpec((1, D), lambda i: (0, 0)),
                  pl.BlockSpec((1, D), lambda i: (0, 0))],
        out_specs=pl.BlockSpec((t, D), lambda i: (i, 0)),
        compiler_params=_MOSAIC_1D,
        cost_estimate=cost,
    )(xp, rp, w_t, b, gamma, beta)
    return out[:M] if Mp != M else out


def ffn_block(x, params):
    """Row-tiled fused FFN: linear1 -> relu -> linear2 -> residual -> LN3."""
    M, D = x.shape
    F_ = params['linear1_wT'].shape[1]
    t, Mp = _row_plan(M)
    xp = _pad_rows(x, Mp)
    cost = pl.CostEstimate(
        flops=4 * Mp * D * F_, transcendentals=0,
        bytes_accessed=2 * Mp * D * 4 + 2 * D * F_ * 2 + Mp * F_ * 4)
    out = pl.pallas_call(
        functools.partial(_ffn_kernel, eps=LN_EPS),
        out_shape=jax.ShapeDtypeStruct((Mp, D), jnp.float32),
        grid=(Mp // t,),
        in_specs=[pl.BlockSpec((t, D), lambda i: (i, 0)),
                  pl.BlockSpec((D, F_), lambda i: (0, 0)),
                  pl.BlockSpec((1, F_), lambda i: (0, 0)),
                  pl.BlockSpec((F_, D), lambda i: (0, 0)),
                  pl.BlockSpec((1, D), lambda i: (0, 0)),
                  pl.BlockSpec((1, D), lambda i: (0, 0)),
                  pl.BlockSpec((1, D), lambda i: (0, 0))],
        out_specs=pl.BlockSpec((t, D), lambda i: (i, 0)),
        compiler_params=_MOSAIC_1D,
        cost_estimate=cost,
    )(xp, params['linear1_wT'], params['linear1_b'],
      params['linear2_wT'], params['linear2_b'],
      params['norm3_g'], params['norm3_b'])
    return out[:M] if Mp != M else out


# -------------------- deformable bilinear sampling (4-tap) -------------------

def deform_sample(value, reference_points, offsets, aw, spatial_shapes,
                  n_heads, n_points):
    """4-tap bilinear gather == grid_sample(align_corners=False, zero padding).

    value:   (N, Lin, heads, hd) bf16 (all levels flattened along Lin)
    offsets: (N, Lq, heads, L, P, 2);  aw: (N, Lq, heads, L, P) (softmaxed)
    Returns (N, Lq, heads*hd) bf16.
    """
    # TODO(synk): the data-dependent 4-tap gather stays in XLA; moving it into
    # a Pallas kernel (scalar-prefetched tap indices + DMA gather fused with the
    # weighted reduction and output_proj) is the next optimization step.
    N, Lin, H_, hd = value.shape
    Lq = offsets.shape[1]
    L = len(spatial_shapes)
    value_flat = value.reshape(N, Lin * H_, hd)                 # bf16
    head_off = jnp.arange(H_, dtype=jnp.int32)[None, None, :, None]

    idx_l, w_l = [], []
    start = 0
    for l, (Hl, Wl) in enumerate(spatial_shapes):
        ref_l = reference_points[:, :, l, :][:, :, None, None, :]   # (N,Lq,1,1,2)
        norm = jnp.array([Wl, Hl], jnp.float32)                     # (W, H)
        loc = ref_l + offsets[:, :, :, l] / norm                    # (N,Lq,h,P,2)
        x = loc[..., 0] * Wl - 0.5
        y = loc[..., 1] * Hl - 0.5
        x0 = jnp.floor(x)
        y0 = jnp.floor(y)
        fx, fy = x - x0, y - y0
        x0i, y0i = x0.astype(jnp.int32), y0.astype(jnp.int32)
        aw_l = aw[:, :, :, l]                                       # (N,Lq,h,P)
        idx_c, w_c = [], []
        for dy, dx in ((0, 0), (0, 1), (1, 0), (1, 1)):
            xi, yi = x0i + dx, y0i + dy
            wx = fx if dx else 1.0 - fx
            wy = fy if dy else 1.0 - fy
            valid = (xi >= 0) & (xi < Wl) & (yi >= 0) & (yi < Hl)
            xi = jnp.clip(xi, 0, Wl - 1)
            yi = jnp.clip(yi, 0, Hl - 1)
            idx_c.append((start + yi * Wl + xi) * H_ + head_off)
            w_c.append(jnp.where(valid, wx * wy, 0.0) * aw_l)       # zero padding
        idx_l.append(jnp.stack(idx_c, axis=-1))                     # (N,Lq,h,P,4)
        w_l.append(jnp.stack(w_c, axis=-1))
        start += Hl * Wl

    idx = jnp.stack(idx_l, axis=3)                                  # (N,Lq,h,L,P,4)
    wts = jnp.stack(w_l, axis=3)
    S = Lq * H_ * L * n_points * 4
    gathered = jax.vmap(lambda v, i: jnp.take(v, i, axis=0))(
        value_flat, idx.reshape(N, S))                              # (N,S,hd) bf16
    gathered = gathered.reshape(N, Lq, H_, L, n_points, 4, hd).astype(jnp.float32)
    out = (gathered * wts[..., None]).sum(axis=(3, 4, 5))           # (N,Lq,h,hd)
    return out.reshape(N, Lq, H_ * hd).astype(jnp.bfloat16)


# --------------------------------- the layer --------------------------------

def deformable_decoder_layer(tgt, query_pos, reference_points, src,
                             src_spatial_shapes, src_level_start_index, params,
                             n_heads, n_levels, n_points):
    del src_level_start_index          # level offsets derived from static shapes
    N, Lq, D = tgt.shape
    Lin = src.shape[1]
    hd = D // n_heads

    # -- self attention + residual + LayerNorm2 (single fused kernel) ---------
    tgt = self_attention_block(tgt, query_pos, params['self_attn'],
                               params['norm2_g'], params['norm2_b'], n_heads)

    # -- MSDeformAttn cross attention + residual + LayerNorm1 -----------------
    ca = params['cross_attn']
    # TODO(synk): src_padding_mask (masked_fill of value) not implemented; None assumed.
    value = linear_rows(src.reshape(N * Lin, D), ca['value_proj_wT'],
                        ca['value_proj_b'],
                        out_dtype=jnp.bfloat16).reshape(N, Lin, n_heads, hd)

    off_flat, aw_flat = sampling_projection(
        tgt.reshape(N * Lq, D), query_pos.reshape(N * Lq, D),
        ca, n_heads, n_levels, n_points)
    offsets = off_flat.reshape(N, Lq, n_heads, n_levels, n_points, 2)
    aw = aw_flat.reshape(N, Lq, n_heads, n_levels, n_points)

    cross = deform_sample(value, reference_points, offsets, aw,
                          src_spatial_shapes, n_heads, n_points)

    tgt = proj_res_ln(cross.reshape(N * Lq, D), tgt.reshape(N * Lq, D),
                      ca['output_proj_wT'], ca['output_proj_b'],
                      params['norm1_g'], params['norm1_b']).reshape(N, Lq, D)

    # -- FFN + residual + LayerNorm3 (fused) -----------------------------------
    return ffn_block(tgt.reshape(N * Lq, D), params).reshape(N, Lq, D)


# ---------------------------- parameter handling -----------------------------

def init_params(key, d_model, d_ffn, n_heads, n_levels, n_points):
    """Parameters in the original torch layouts ((out, in) weight matrices)."""
    ks = iter(jax.random.split(key, 16))
    nrm = lambda shape, s=0.02: jax.random.normal(next(ks), shape, jnp.float32) * s
    zeros = lambda n: jnp.zeros((n,), jnp.float32)
    ones = lambda n: jnp.ones((n,), jnp.float32)
    D, F_ = d_model, d_ffn
    hlp = n_heads * n_levels * n_points
    return {
        'self_attn': {
            'in_proj_weight': nrm((3 * D, D)), 'in_proj_bias': nrm((3 * D,)),
            'out_proj_w': nrm((D, D)), 'out_proj_b': zeros(D),
        },
        'cross_attn': {
            'value_proj_w': nrm((D, D)), 'value_proj_b': zeros(D),
            'sampling_offsets_w': nrm((2 * hlp, D)),
            'sampling_offsets_b': nrm((2 * hlp,), 0.25),
            'attention_weights_w': nrm((hlp, D)), 'attention_weights_b': zeros(hlp),
            'output_proj_w': nrm((D, D)), 'output_proj_b': zeros(D),
        },
        'norm1_g': ones(D), 'norm1_b': zeros(D),
        'norm2_g': ones(D), 'norm2_b': zeros(D),
        'norm3_g': ones(D), 'norm3_b': zeros(D),
        'linear1_w': nrm((F_, D)), 'linear1_b': zeros(F_),
        'linear2_w': nrm((D, F_)), 'linear2_b': zeros(D),
    }


def pack_params(p, d_model):
    """One-time repack: pre-transpose matmul weights to (Din, Dout) bf16,
    fuse q/k and the two sampling projections, shape biases / LN as (1, X)."""
    D = d_model
    bf = lambda w: w.T.astype(jnp.bfloat16)
    row = lambda b: b.reshape(1, -1).astype(jnp.float32)
    sa, ca = p['self_attn'], p['cross_attn']
    ipw, ipb = sa['in_proj_weight'], sa['in_proj_bias']
    return {
        'self_attn': {
            'wqk': bf(ipw[:2 * D]), 'bqk': row(ipb[:2 * D]),
            'wv': bf(ipw[2 * D:]), 'bv': row(ipb[2 * D:]),
            'wo': bf(sa['out_proj_w']), 'bo': row(sa['out_proj_b']),
        },
        'cross_attn': {
            'value_proj_wT': bf(ca['value_proj_w']),
            'value_proj_b': row(ca['value_proj_b']),
            'samp_wT': jnp.concatenate(
                [ca['sampling_offsets_w'].T, ca['attention_weights_w'].T],
                axis=1).astype(jnp.bfloat16),
            'samp_b': row(jnp.concatenate(
                [ca['sampling_offsets_b'], ca['attention_weights_b']])),
            'output_proj_wT': bf(ca['output_proj_w']),
            'output_proj_b': row(ca['output_proj_b']),
        },
        'linear1_wT': bf(p['linear1_w']), 'linear1_b': row(p['linear1_b']),
        'linear2_wT': bf(p['linear2_w']), 'linear2_b': row(p['linear2_b']),
        'norm1_g': row(p['norm1_g']), 'norm1_b': row(p['norm1_b']),
        'norm2_g': row(p['norm2_g']), 'norm2_b': row(p['norm2_b']),
        'norm3_g': row(p['norm3_g']), 'norm3_b': row(p['norm3_b']),
    }


if __name__ == "__main__":
    d_model, d_ffn, n_heads, n_levels, n_points = 32, 64, 4, 2, 2
    N, Lq = 2, 8
    spatial_shapes = ((8, 8), (4, 4))              # static per-level (H, W)
    Lin = sum(h * w for h, w in spatial_shapes)    # 80

    key = jax.random.PRNGKey(0)
    kp, kt, kq, kr, ks = jax.random.split(key, 5)
    params = pack_params(
        init_params(kp, d_model, d_ffn, n_heads, n_levels, n_points), d_model)

    tgt = jax.random.normal(kt, (N, Lq, d_model), jnp.float32)
    query_pos = jax.random.normal(kq, (N, Lq, d_model), jnp.float32)
    reference_points = jax.random.uniform(kr, (N, Lq, n_levels, 2), jnp.float32)
    src = jax.random.normal(ks, (N, Lin, d_model), jnp.float32)
    level_start_index = jnp.array(
        [0, spatial_shapes[0][0] * spatial_shapes[0][1]], jnp.int32)

    fwd = jax.jit(deformable_decoder_layer,
                  static_argnames=("src_spatial_shapes", "n_heads",
                                   "n_levels", "n_points"))
    out = fwd(tgt, query_pos, reference_points, src,
              src_spatial_shapes=spatial_shapes,
              src_level_start_index=level_start_index,
              params=params, n_heads=n_heads, n_levels=n_levels,
              n_points=n_points)
    out = jax.block_until_ready(out)
    assert out.shape == (N, Lq, d_model)
    assert bool(jnp.all(jnp.isfinite(out)))
    print("KERNEL_OK")
</pallas_src>

<mosaic_0001>
module attributes {stable_mosaic.version = 11 : i64} {
  func.func @_self_attn_ln_kernel(%arg0: i32, %arg1: memref<1x8x32xf32, #tpu.memory_space<vmem>>, %arg2: memref<1x8x32xf32, #tpu.memory_space<vmem>>, %arg3: memref<32x64xbf16, #tpu.memory_space<vmem>>, %arg4: memref<1x64xf32, #tpu.memory_space<vmem>>, %arg5: memref<32x32xbf16, #tpu.memory_space<vmem>>, %arg6: memref<1x32xf32, #tpu.memory_space<vmem>>, %arg7: memref<32x32xbf16, #tpu.memory_space<vmem>>, %arg8: memref<1x32xf32, #tpu.memory_space<vmem>>, %arg9: memref<1x32xf32, #tpu.memory_space<vmem>>, %arg10: memref<1x32xf32, #tpu.memory_space<vmem>>, %arg11: memref<1x8x32xf32, #tpu.memory_space<vmem>>) attributes {dimension_semantics = [#tpu.dimension_semantics<parallel>], iteration_bounds = array<i64: 2>, scalar_prefetch = 0 : i64, scratch_operands = 0 : i64, tpu.core_type = #tpu.core_type<tc>, window_params = [{transform_indices = @transform_0, window_bounds = array<i64: 1, 8, 32>}, {transform_indices = @transform_1, window_bounds = array<i64: 1, 8, 32>}, {pipeline_mode = #tpu.pipeline_mode<synchronous>, transform_indices = @transform_2, window_bounds = array<i64: 32, 64>}, {pipeline_mode = #tpu.pipeline_mode<synchronous>, transform_indices = @transform_3, window_bounds = array<i64: 1, 64>}, {pipeline_mode = #tpu.pipeline_mode<synchronous>, transform_indices = @transform_4, window_bounds = array<i64: 32, 32>}, {pipeline_mode = #tpu.pipeline_mode<synchronous>, transform_indices = @transform_5, window_bounds = array<i64: 1, 32>}, {pipeline_mode = #tpu.pipeline_mode<synchronous>, transform_indices = @transform_6, window_bounds = array<i64: 32, 32>}, {pipeline_mode = #tpu.pipeline_mode<synchronous>, transform_indices = @transform_7, window_bounds = array<i64: 1, 32>}, {pipeline_mode = #tpu.pipeline_mode<synchronous>, transform_indices = @transform_8, window_bounds = array<i64: 1, 32>}, {pipeline_mode = #tpu.pipeline_mode<synchronous>, transform_indices = @transform_9, window_bounds = array<i64: 1, 32>}, {transform_indices = @transform_10, window_bounds = array<i64: 1, 8, 32>}]} {
    %c0 = arith.constant 0 : index
    %c0_0 = arith.constant 0 : index
    %c0_1 = arith.constant 0 : index
    %0 = vector.load %arg1[%c0, %c0_0, %c0_1] : memref<1x8x32xf32, #tpu.memory_space<vmem>>, vector<1x8x32xf32>
    %1 = vector.shape_cast %0 : vector<1x8x32xf32> to vector<8x32xf32>
    %c0_2 = arith.constant 0 : index
    %c0_3 = arith.constant 0 : index
    %c0_4 = arith.constant 0 : index
    %2 = vector.load %arg2[%c0_2, %c0_3, %c0_4] : memref<1x8x32xf32, #tpu.memory_space<vmem>>, vector<1x8x32xf32>
    %3 = vector.shape_cast %2 : vector<1x8x32xf32> to vector<8x32xf32>
    %4 = arith.addf %1, %3 : vector<8x32xf32>
    %5 = arith.truncf %4 : vector<8x32xf32> to vector<8x32xbf16>
    %c0_5 = arith.constant 0 : index
    %c0_6 = arith.constant 0 : index
    %6 = vector.load %arg3[%c0_5, %c0_6] : memref<32x64xbf16, #tpu.memory_space<vmem>>, vector<32x64xbf16>
    %cst = arith.constant dense<0.000000e+00> : vector<8x64xf32>
    %7 = tpu.matmul %5, %6, %cst {dimension_numbers = #tpu.dot_dimension_numbers<[1], [0], [0], [1], [0, 0, 1, 1], [], []>} : vector<8x32xbf16>, vector<32x64xbf16>, vector<8x64xf32> -> vector<8x64xf32>
    %c0_7 = arith.constant 0 : index
    %c0_8 = arith.constant 0 : index
    %8 = vector.load %arg4[%c0_7, %c0_8] : memref<1x64xf32, #tpu.memory_space<vmem>>, vector<1x64xf32>
    %9 = vector.broadcast %8 : vector<1x64xf32> to vector<8x64xf32>
    %10 = arith.addf %7, %9 : vector<8x64xf32>
    %11 = arith.truncf %1 : vector<8x32xf32> to vector<8x32xbf16>
    %c0_9 = arith.constant 0 : index
    %c0_10 = arith.constant 0 : index
    %12 = vector.load %arg5[%c0_9, %c0_10] : memref<32x32xbf16, #tpu.memory_space<vmem>>, vector<32x32xbf16>
    %cst_11 = arith.constant dense<0.000000e+00> : vector<8x32xf32>
    %13 = tpu.matmul %11, %12, %cst_11 {dimension_numbers = #tpu.dot_dimension_numbers<[1], [0], [0], [1], [0, 0, 1, 1], [], []>} : vector<8x32xbf16>, vector<32x32xbf16>, vector<8x32xf32> -> vector<8x32xf32>
    %c0_12 = arith.constant 0 : index
    %c0_13 = arith.constant 0 : index
    %14 = vector.load %arg6[%c0_12, %c0_13] : memref<1x32xf32, #tpu.memory_space<vmem>>, vector<1x32xf32>
    %15 = vector.broadcast %14 : vector<1x32xf32> to vector<8x32xf32>
    %16 = arith.addf %13, %15 : vector<8x32xf32>
    %17 = vector.extract_strided_slice %10 {offsets = [0, 0], sizes = [8, 32], strides = [1, 1]} : vector<8x64xf32> to vector<8x32xf32>
    %cst_14 = arith.constant 0.353553385 : f32
    %18 = vector.broadcast %cst_14 : f32 to vector<8x32xf32>
    %19 = arith.mulf %17, %18 : vector<8x32xf32>
    %20 = vector.shape_cast %19 : vector<8x32xf32> to vector<8x4x8xf32>
    %21 = tpu.transpose %20, [1, 0, 2] : vector<8x4x8xf32> -> vector<4x8x8xf32>
    %22 = vector.extract_strided_slice %10 {offsets = [0, 32], sizes = [8, 32], strides = [1, 1]} : vector<8x64xf32> to vector<8x32xf32>
    %23 = vector.shape_cast %22 : vector<8x32xf32> to vector<8x4x8xf32>
    %24 = tpu.transpose %23, [1, 0, 2] : vector<8x4x8xf32> -> vector<4x8x8xf32>
    %25 = vector.shape_cast %16 : vector<8x32xf32> to vector<8x4x8xf32>
    %26 = tpu.transpose %25, [1, 0, 2] : vector<8x4x8xf32> -> vector<4x8x8xf32>
    %27 = arith.truncf %21 : vector<4x8x8xf32> to vector<4x8x8xbf16>
    %28 = arith.truncf %24 : vector<4x8x8xf32> to vector<4x8x8xbf16>
    "tpu.trace_start"() <{level = 10 : i32, message = "hqd,hkd->hqk"}> : () -> ()
    %cst_15 = arith.constant dense<0.000000e+00> : vector<4x8x8xf32>
    %29 = tpu.matmul %27, %28, %cst_15 {dimension_numbers = #tpu.dot_dimension_numbers<[2], [2], [1], [1], [0, 0, 0, 1, 1, 1], [0], [0]>} : vector<4x8x8xbf16>, vector<4x8x8xbf16>, vector<4x8x8xf32> -> vector<4x8x8xf32>
    "tpu.trace_stop"() : () -> ()
    %cst_16 = arith.constant dense<0xFF800000> : vector<4x8xf32>
    %30 = vector.multi_reduction <maximumf>, %29, %cst_16 [2] : vector<4x8x8xf32> to vector<4x8xf32>
    %31 = vector.shape_cast %30 : vector<4x8xf32> to vector<4x8x1xf32>
    %32 = vector.broadcast %31 : vector<4x8x1xf32> to vector<4x8x8xf32>
    %33 = arith.subf %29, %32 : vector<4x8x8xf32>
    %34 = math.exp %33 : vector<4x8x8xf32>
    %cst_17 = arith.constant dense<0.000000e+00> : vector<4x8xf32>
    %35 = vector.multi_reduction <add>, %34, %cst_17 [2] : vector<4x8x8xf32> to vector<4x8xf32>
    %36 = vector.shape_cast %35 : vector<4x8xf32> to vector<4x8x1xf32>
    %37 = tpu.reciprocal %36 {approx = true} : vector<4x8x1xf32> -> vector<4x8x1xf32>
    %38 = vector.broadcast %37 : vector<4x8x1xf32> to vector<4x8x8xf32>
    %39 = arith.mulf %34, %38 : vector<4x8x8xf32>
    %40 = arith.truncf %39 : vector<4x8x8xf32> to vector<4x8x8xbf16>
    %41 = arith.truncf %26 : vector<4x8x8xf32> to vector<4x8x8xbf16>
    "tpu.trace_start"() <{level = 10 : i32, message = "hqk,hkd->hqd"}> : () -> ()
    %cst_18 = arith.constant dense<0.000000e+00> : vector<4x8x8xf32>
    %42 = tpu.matmul %40, %41, %cst_18 {dimension_numbers = #tpu.dot_dimension_numbers<[2], [1], [1], [2], [0, 0, 0, 1, 1, 2], [0], [0]>} : vector<4x8x8xbf16>, vector<4x8x8xbf16>, vector<4x8x8xf32> -> vector<4x8x8xf32>
    "tpu.trace_stop"() : () -> ()
    %43 = tpu.transpose %42, [1, 0, 2] : vector<4x8x8xf32> -> vector<8x4x8xf32>
    %44 = vector.shape_cast %43 : vector<8x4x8xf32> to vector<8x32xf32>
    %45 = arith.truncf %44 : vector<8x32xf32> to vector<8x32xbf16>
    %c0_19 = arith.constant 0 : index
    %c0_20 = arith.constant 0 : index
    %46 = vector.load %arg7[%c0_19, %c0_20] : memref<32x32xbf16, #tpu.memory_space<vmem>>, vector<32x32xbf16>
    %cst_21 = arith.constant dense<0.000000e+00> : vector<8x32xf32>
    %47 = tpu.matmul %45, %46, %cst_21 {dimension_numbers = #tpu.dot_dimension_numbers<[1], [0], [0], [1], [0, 0, 1, 1], [], []>} : vector<8x32xbf16>, vector<32x32xbf16>, vector<8x32xf32> -> vector<8x32xf32>
    %c0_22 = arith.constant 0 : index
    %c0_23 = arith.constant 0 : index
    %48 = vector.load %arg8[%c0_22, %c0_23] : memref<1x32xf32, #tpu.memory_space<vmem>>, vector<1x32xf32>
    %49 = vector.broadcast %48 : vector<1x32xf32> to vector<8x32xf32>
    %50 = arith.addf %47, %49 : vector<8x32xf32>
    %51 = arith.addf %1, %50 : vector<8x32xf32>
    %cst_24 = arith.constant dense<0.000000e+00> : vector<8xf32>
    %52 = vector.multi_reduction <add>, %51, %cst_24 [1] : vector<8x32xf32> to vector<8xf32>
    %53 = vector.shape_cast %52 : vector<8xf32> to vector<8x1xf32>
    %cst_25 = arith.constant 3.200000e+01 : f32
    %54 = vector.broadcast %cst_25 : f32 to vector<8x1xf32>
    %55 = arith.divf %53, %54 : vector<8x1xf32>
    %56 = vector.broadcast %55 : vector<8x1xf32> to vector<8x32xf32>
    %57 = arith.subf %51, %56 : vector<8x32xf32>
    %58 = arith.mulf %57, %57 : vector<8x32xf32>
    %cst_26 = arith.constant dense<0.000000e+00> : vector<8xf32>
    %59 = vector.multi_reduction <add>, %58, %cst_26 [1] : vector<8x32xf32> to vector<8xf32>
    %60 = vector.shape_cast %59 : vector<8xf32> to vector<8x1xf32>
    %cst_27 = arith.constant 3.200000e+01 : f32
    %61 = vector.broadcast %cst_27 : f32 to vector<8x1xf32>
    %62 = arith.divf %60, %61 : vector<8x1xf32>
    %63 = vector.broadcast %55 : vector<8x1xf32> to vector<8x32xf32>
    %64 = arith.subf %51, %63 : vector<8x32xf32>
    %cst_28 = arith.constant 9.99999974E-6 : f32
    %65 = vector.broadcast %cst_28 : f32 to vector<8x1xf32>
    %66 = arith.addf %62, %65 : vector<8x1xf32>
    %67 = math.rsqrt %66 : vector<8x1xf32>
    %68 = vector.broadcast %67 : vector<8x1xf32> to vector<8x32xf32>
    %69 = arith.mulf %64, %68 : vector<8x32xf32>
    %c0_29 = arith.constant 0 : index
    %c0_30 = arith.constant 0 : index
    %70 = vector.load %arg9[%c0_29, %c0_30] : memref<1x32xf32, #tpu.memory_space<vmem>>, vector<1x32xf32>
    %71 = vector.broadcast %70 : vector<1x32xf32> to vector<8x32xf32>
    %72 = arith.mulf %69, %71 : vector<8x32xf32>
    %c0_31 = arith.constant 0 : index
    %c0_32 = arith.constant 0 : index
    %73 = vector.load %arg10[%c0_31, %c0_32] : memref<1x32xf32, #tpu.memory_space<vmem>>, vector<1x32xf32>
    %74 = vector.broadcast %73 : vector<1x32xf32> to vector<8x32xf32>
    %75 = arith.addf %72, %74 : vector<8x32xf32>
    %c0_33 = arith.constant 0 : index
    %c0_34 = arith.constant 0 : index
    %c0_35 = arith.constant 0 : index
    %76 = vector.load %arg11[%c0_33, %c0_34, %c0_35] : memref<1x8x32xf32, #tpu.memory_space<vmem>>, vector<1x8x32xf32>
    %77 = vector.shape_cast %76 : vector<1x8x32xf32> to vector<8x32xf32>
    %78 = vector.shape_cast %75 : vector<8x32xf32> to vector<1x8x32xf32>
    tpu.vector_store %arg11[%c0_33, %c0_34, %c0_35], %78 {strides = array<i32>} : memref<1x8x32xf32, #tpu.memory_space<vmem>>, vector<1x8x32xf32>,
    return
  }
  func.func @transform_0(%arg0: i32) -> (i32, i32, i32) {
    %c0_i32 = arith.constant 0 : i32
    %c0_i32_0 = arith.constant 0 : i32
    %c0_i32_1 = arith.constant 0 : i32
    return %arg0, %c0_i32, %c0_i32_0 : i32, i32, i32
  }
  func.func @transform_1(%arg0: i32) -> (i32, i32, i32) {
    %c0_i32 = arith.constant 0 : i32
    %c0_i32_0 = arith.constant 0 : i32
    %c0_i32_1 = arith.constant 0 : i32
    return %arg0, %c0_i32, %c0_i32_0 : i32, i32, i32
  }
  func.func @transform_2(%arg0: i32) -> (i32, i32) {
    %c0_i32 = arith.constant 0 : i32
    %c0_i32_0 = arith.constant 0 : i32
    %c0_i32_1 = arith.constant 0 : i32
    return %c0_i32, %c0_i32_0 : i32, i32
  }
  func.func @transform_3(%arg0: i32) -> (i32, i32) {
    %c0_i32 = arith.constant 0 : i32
    %c0_i32_0 = arith.constant 0 : i32
    %c0_i32_1 = arith.constant 0 : i32
    return %c0_i32, %c0_i32_0 : i32, i32
  }
  func.func @transform_4(%arg0: i32) -> (i32, i32) {
    %c0_i32 = arith.constant 0 : i32
    %c0_i32_0 = arith.constant 0 : i32
    %c0_i32_1 = arith.constant 0 : i32
    return %c0_i32, %c0_i32_0 : i32, i32
  }
  func.func @transform_5(%arg0: i32) -> (i32, i32) {
    %c0_i32 = arith.constant 0 : i32
    %c0_i32_0 = arith.constant 0 : i32
    %c0_i32_1 = arith.constant 0 : i32
    return %c0_i32, %c0_i32_0 : i32, i32
  }
  func.func @transform_6(%arg0: i32) -> (i32, i32) {
    %c0_i32 = arith.constant 0 : i32
    %c0_i32_0 = arith.constant 0 : i32
    %c0_i32_1 = arith.constant 0 : i32
    return %c0_i32, %c0_i32_0 : i32, i32
  }
  func.func @transform_7(%arg0: i32) -> (i32, i32) {
    %c0_i32 = arith.constant 0 : i32
    %c0_i32_0 = arith.constant 0 : i32
    %c0_i32_1 = arith.constant 0 : i32
    return %c0_i32, %c0_i32_0 : i32, i32
  }
  func.func @transform_8(%arg0: i32) -> (i32, i32) {
    %c0_i32 = arith.constant 0 : i32
    %c0_i32_0 = arith.constant 0 : i32
    %c0_i32_1 = arith.constant 0 : i32
    return %c0_i32, %c0_i32_0 : i32, i32
  }
  func.func @transform_9(%arg0: i32) -> (i32, i32) {
    %c0_i32 = arith.constant 0 : i32
    %c0_i32_0 = arith.constant 0 : i32
    %c0_i32_1 = arith.constant 0 : i32
    return %c0_i32, %c0_i32_0 : i32, i32
  }
  func.func @transform_10(%arg0: i32) -> (i32, i32, i32) {
    %c0_i32 = arith.constant 0 : i32
    %c0_i32_0 = arith.constant 0 : i32
    %c0_i32_1 = arith.constant 0 : i32
    return %arg0, %c0_i32, %c0_i32_0 : i32, i32, i32
  }
}

module attributes {stable_mosaic.version = 11 : i64} {
  func.func @_samp_proj_kernel(%arg0: i32, %arg1: memref<16x32xf32, #tpu.memory_space<vmem>>, %arg2: memref<16x32xf32, #tpu.memory_space<vmem>>, %arg3: memref<32x48xbf16, #tpu.memory_space<vmem>>, %arg4: memref<1x48xf32, #tpu.memory_space<vmem>>, %arg5: memref<16x32xf32, #tpu.memory_space<vmem>>, %arg6: memref<16x16xf32, #tpu.memory_space<vmem>>) attributes {dimension_semantics = [#tpu.dimension_semantics<parallel>], iteration_bounds = array<i64: 1>, scalar_prefetch = 0 : i64, scratch_operands = 0 : i64, tpu.core_type = #tpu.core_type<tc>, window_params = [{transform_indices = @transform_0, window_bounds = array<i64: 16, 32>}, {transform_indices = @transform_1, window_bounds = array<i64: 16, 32>}, {pipeline_mode = #tpu.pipeline_mode<synchronous>, transform_indices = @transform_2, window_bounds = array<i64: 32, 48>}, {pipeline_mode = #tpu.pipeline_mode<synchronous>, transform_indices = @transform_3, window_bounds = array<i64: 1, 48>}, {transform_indices = @transform_4, window_bounds = array<i64: 16, 32>}, {transform_indices = @transform_5, window_bounds = array<i64: 16, 16>}]} {
    %c0 = arith.constant 0 : index
    %c0_0 = arith.constant 0 : index
    %0 = vector.load %arg1[%c0, %c0_0] : memref<16x32xf32, #tpu.memory_space<vmem>>, vector<16x32xf32>
    %c0_1 = arith.constant 0 : index
    %c0_2 = arith.constant 0 : index
    %1 = vector.load %arg2[%c0_1, %c0_2] : memref<16x32xf32, #tpu.memory_space<vmem>>, vector<16x32xf32>
    %2 = arith.addf %0, %1 : vector<16x32xf32>
    %3 = arith.truncf %2 : vector<16x32xf32> to vector<16x32xbf16>
    %c0_3 = arith.constant 0 : index
    %c0_4 = arith.constant 0 : index
    %4 = vector.load %arg3[%c0_3, %c0_4] : memref<32x48xbf16, #tpu.memory_space<vmem>>, vector<32x48xbf16>
    %cst = arith.constant dense<0.000000e+00> : vector<16x48xf32>
    %5 = tpu.matmul %3, %4, %cst {dimension_numbers = #tpu.dot_dimension_numbers<[1], [0], [0], [1], [0, 0, 1, 1], [], []>} : vector<16x32xbf16>, vector<32x48xbf16>, vector<16x48xf32> -> vector<16x48xf32>
    %c0_5 = arith.constant 0 : index
    %c0_6 = arith.constant 0 : index
    %6 = vector.load %arg4[%c0_5, %c0_6] : memref<1x48xf32, #tpu.memory_space<vmem>>, vector<1x48xf32>
    %7 = vector.broadcast %6 : vector<1x48xf32> to vector<16x48xf32>
    %8 = arith.addf %5, %7 : vector<16x48xf32>
    %9 = vector.extract_strided_slice %8 {offsets = [0, 0], sizes = [16, 32], strides = [1, 1]} : vector<16x48xf32> to vector<16x32xf32>
    %c0_7 = arith.constant 0 : index
    %c0_8 = arith.constant 0 : index
    %10 = vector.load %arg5[%c0_7, %c0_8] : memref<16x32xf32, #tpu.memory_space<vmem>>, vector<16x32xf32>
    tpu.vector_store %arg5[%c0_7, %c0_8], %9 {strides = array<i32>} : memref<16x32xf32, #tpu.memory_space<vmem>>, vector<16x32xf32>,
    %11 = vector.extract_strided_slice %8 {offsets = [0, 32], sizes = [16, 16], strides = [1, 1]} : vector<16x48xf32> to vector<16x16xf32>
    %12 = vector.shape_cast %11 : vector<16x16xf32> to vector<16x4x4xf32>
    %cst_9 = arith.constant dense<0xFF800000> : vector<16x4xf32>
    %13 = vector.multi_reduction <maximumf>, %12, %cst_9 [2] : vector<16x4x4xf32> to vector<16x4xf32>
    %14 = vector.shape_cast %13 : vector<16x4xf32> to vector<16x4x1xf32>
    %15 = vector.broadcast %14 : vector<16x4x1xf32> to vector<16x4x4xf32>
    %16 = arith.subf %12, %15 : vector<16x4x4xf32>
    %17 = math.exp %16 : vector<16x4x4xf32>
    %cst_10 = arith.constant dense<0.000000e+00> : vector<16x4xf32>
    %18 = vector.multi_reduction <add>, %17, %cst_10 [2] : vector<16x4x4xf32> to vector<16x4xf32>
    %19 = vector.shape_cast %18 : vector<16x4xf32> to vector<16x4x1xf32>
    %20 = tpu.reciprocal %19 {approx = true} : vector<16x4x1xf32> -> vector<16x4x1xf32>
    %21 = vector.broadcast %20 : vector<16x4x1xf32> to vector<16x4x4xf32>
    %22 = arith.mulf %17, %21 : vector<16x4x4xf32>
    %23 = vector.shape_cast %22 : vector<16x4x4xf32> to vector<16x16xf32>
    %c0_11 = arith.constant 0 : index
    %c0_12 = arith.constant 0 : index
    %24 = vector.load %arg6[%c0_11, %c0_12] : memref<16x16xf32, #tpu.memory_space<vmem>>, vector<16x16xf32>
    tpu.vector_store %arg6[%c0_11, %c0_12], %23 {strides = array<i32>} : memref<16x16xf32, #tpu.memory_space<vmem>>, vector<16x16xf32>,
    return
  }
  func.func @transform_0(%arg0: i32) -> (i32, i32) {
    %c0_i32 = arith.constant 0 : i32
    %c0_i32_0 = arith.constant 0 : i32
    return %arg0, %c0_i32 : i32, i32
  }
  func.func @transform_1(%arg0: i32) -> (i32, i32) {
    %c0_i32 = arith.constant 0 : i32
    %c0_i32_0 = arith.constant 0 : i32
    return %arg0, %c0_i32 : i32, i32
  }
  func.func @transform_2(%arg0: i32) -> (i32, i32) {
    %c0_i32 = arith.constant 0 : i32
    %c0_i32_0 = arith.constant 0 : i32
    %c0_i32_1 = arith.constant 0 : i32
    return %c0_i32, %c0_i32_0 : i32, i32
  }
  func.func @transform_3(%arg0: i32) -> (i32, i32) {
    %c0_i32 = arith.constant 0 : i32
    %c0_i32_0 = arith.constant 0 : i32
    %c0_i32_1 = arith.constant 0 : i32
    return %c0_i32, %c0_i32_0 : i32, i32
  }
  func.func @transform_4(%arg0: i32) -> (i32, i32) {
    %c0_i32 = arith.constant 0 : i32
    %c0_i32_0 = arith.constant 0 : i32
    return %arg0, %c0_i32 : i32, i32
  }
  func.func @transform_5(%arg0: i32) -> (i32, i32) {
    %c0_i32 = arith.constant 0 : i32
    %c0_i32_0 = arith.constant 0 : i32
    return %arg0, %c0_i32 : i32, i32
  }
}

module attributes {stable_mosaic.version = 11 : i64} {
  func.func @_linear_kernel(%arg0: i32, %arg1: memref<160x32xf32, #tpu.memory_space<vmem>>, %arg2: memref<32x32xbf16, #tpu.memory_space<vmem>>, %arg3: memref<1x32xf32, #tpu.memory_space<vmem>>, %arg4: memref<160x32xbf16, #tpu.memory_space<vmem>>) attributes {dimension_semantics = [#tpu.dimension_semantics<parallel>], iteration_bounds = array<i64: 1>, scalar_prefetch = 0 : i64, scratch_operands = 0 : i64, tpu.core_type = #tpu.core_type<tc>, window_params = [{transform_indices = @transform_0, window_bounds = array<i64: 160, 32>}, {pipeline_mode = #tpu.pipeline_mode<synchronous>, transform_indices = @transform_1, window_bounds = array<i64: 32, 32>}, {pipeline_mode = #tpu.pipeline_mode<synchronous>, transform_indices = @transform_2, window_bounds = array<i64: 1, 32>}, {transform_indices = @transform_3, window_bounds = array<i64: 160, 32>}]} {
    %c0 = arith.constant 0 : index
    %c0_0 = arith.constant 0 : index
    %0 = vector.load %arg1[%c0, %c0_0] : memref<160x32xf32, #tpu.memory_space<vmem>>, vector<160x32xf32>
    %1 = arith.truncf %0 : vector<160x32xf32> to vector<160x32xbf16>
    %c0_1 = arith.constant 0 : index
    %c0_2 = arith.constant 0 : index
    %2 = vector.load %arg2[%c0_1, %c0_2] : memref<32x32xbf16, #tpu.memory_space<vmem>>, vector<32x32xbf16>
    %cst = arith.constant dense<0.000000e+00> : vector<160x32xf32>
    %3 = tpu.matmul %1, %2, %cst {dimension_numbers = #tpu.dot_dimension_numbers<[1], [0], [0], [1], [0, 0, 1, 1], [], []>} : vector<160x32xbf16>, vector<32x32xbf16>, vector<160x32xf32> -> vector<160x32xf32>
    %c0_3 = arith.constant 0 : index
    %c0_4 = arith.constant 0 : index
    %4 = vector.load %arg3[%c0_3, %c0_4] : memref<1x32xf32, #tpu.memory_space<vmem>>, vector<1x32xf32>
    %5 = vector.broadcast %4 : vector<1x32xf32> to vector<160x32xf32>
    %6 = arith.addf %3, %5 : vector<160x32xf32>
    %7 = arith.truncf %6 : vector<160x32xf32> to vector<160x32xbf16>
    %c0_5 = arith.constant 0 : index
    %c0_6 = arith.constant 0 : index
    %8 = vector.load %arg4[%c0_5, %c0_6] : memref<160x32xbf16, #tpu.memory_space<vmem>>, vector<160x32xbf16>
    tpu.vector_store %arg4[%c0_5, %c0_6], %7 {strides = array<i32>} : memref<160x32xbf16, #tpu.memory_space<vmem>>, vector<160x32xbf16>,
    return
  }
  func.func @transform_0(%arg0: i32) -> (i32, i32) {
    %c0_i32 = arith.constant 0 : i32
    %c0_i32_0 = arith.constant 0 : i32
    return %arg0, %c0_i32 : i32, i32
  }
  func.func @transform_1(%arg0: i32) -> (i32, i32) {
    %c0_i32 = arith.constant 0 : i32
    %c0_i32_0 = arith.constant 0 : i32
    %c0_i32_1 = arith.constant 0 : i32
    return %c0_i32, %c0_i32_0 : i32, i32
  }
  func.func @transform_2(%arg0: i32) -> (i32, i32) {
    %c0_i32 = arith.constant 0 : i32
    %c0_i32_0 = arith.constant 0 : i32
    %c0_i32_1 = arith.constant 0 : i32
    return %c0_i32, %c0_i32_0 : i32, i32
  }
  func.func @transform_3(%arg0: i32) -> (i32, i32) {
    %c0_i32 = arith.constant 0 : i32
    %c0_i32_0 = arith.constant 0 : i32
    return %arg0, %c0_i32 : i32, i32
  }
}

module attributes {stable_mosaic.version = 11 : i64} {
  func.func @_proj_res_ln_kernel(%arg0: i32, %arg1: memref<16x32xbf16, #tpu.memory_space<vmem>>, %arg2: memref<16x32xf32, #tpu.memory_space<vmem>>, %arg3: memref<32x32xbf16, #tpu.memory_space<vmem>>, %arg4: memref<1x32xf32, #tpu.memory_space<vmem>>, %arg5: memref<1x32xf32, #tpu.memory_space<vmem>>, %arg6: memref<1x32xf32, #tpu.memory_space<vmem>>, %arg7: memref<16x32xf32, #tpu.memory_space<vmem>>) attributes {dimension_semantics = [#tpu.dimension_semantics<parallel>], iteration_bounds = array<i64: 1>, scalar_prefetch = 0 : i64, scratch_operands = 0 : i64, tpu.core_type = #tpu.core_type<tc>, window_params = [{transform_indices = @transform_0, window_bounds = array<i64: 16, 32>}, {transform_indices = @transform_1, window_bounds = array<i64: 16, 32>}, {pipeline_mode = #tpu.pipeline_mode<synchronous>, transform_indices = @transform_2, window_bounds = array<i64: 32, 32>}, {pipeline_mode = #tpu.pipeline_mode<synchronous>, transform_indices = @transform_3, window_bounds = array<i64: 1, 32>}, {pipeline_mode = #tpu.pipeline_mode<synchronous>, transform_indices = @transform_4, window_bounds = array<i64: 1, 32>}, {pipeline_mode = #tpu.pipeline_mode<synchronous>, transform_indices = @transform_5, window_bounds = array<i64: 1, 32>}, {transform_indices = @transform_6, window_bounds = array<i64: 16, 32>}]} {
    %c0 = arith.constant 0 : index
    %c0_0 = arith.constant 0 : index
    %0 = vector.load %arg1[%c0, %c0_0] : memref<16x32xbf16, #tpu.memory_space<vmem>>, vector<16x32xbf16>
    %c0_1 = arith.constant 0 : index
    %c0_2 = arith.constant 0 : index
    %1 = vector.load %arg3[%c0_1, %c0_2] : memref<32x32xbf16, #tpu.memory_space<vmem>>, vector<32x32xbf16>
    %cst = arith.constant dense<0.000000e+00> : vector<16x32xf32>
    %2 = tpu.matmul %0, %1, %cst {dimension_numbers = #tpu.dot_dimension_numbers<[1], [0], [0], [1], [0, 0, 1, 1], [], []>} : vector<16x32xbf16>, vector<32x32xbf16>, vector<16x32xf32> -> vector<16x32xf32>
    %c0_3 = arith.constant 0 : index
    %c0_4 = arith.constant 0 : index
    %3 = vector.load %arg4[%c0_3, %c0_4] : memref<1x32xf32, #tpu.memory_space<vmem>>, vector<1x32xf32>
    %4 = vector.broadcast %3 : vector<1x32xf32> to vector<16x32xf32>
    %5 = arith.addf %2, %4 : vector<16x32xf32>
    %c0_5 = arith.constant 0 : index
    %c0_6 = arith.constant 0 : index
    %6 = vector.load %arg2[%c0_5, %c0_6] : memref<16x32xf32, #tpu.memory_space<vmem>>, vector<16x32xf32>
    %7 = arith.addf %6, %5 : vector<16x32xf32>
    %cst_7 = arith.constant dense<0.000000e+00> : vector<16xf32>
    %8 = vector.multi_reduction <add>, %7, %cst_7 [1] : vector<16x32xf32> to vector<16xf32>
    %9 = vector.shape_cast %8 : vector<16xf32> to vector<16x1xf32>
    %cst_8 = arith.constant 3.200000e+01 : f32
    %10 = vector.broadcast %cst_8 : f32 to vector<16x1xf32>
    %11 = arith.divf %9, %10 : vector<16x1xf32>
    %12 = vector.broadcast %11 : vector<16x1xf32> to vector<16x32xf32>
    %13 = arith.subf %7, %12 : vector<16x32xf32>
    %14 = arith.mulf %13, %13 : vector<16x32xf32>
    %cst_9 = arith.constant dense<0.000000e+00> : vector<16xf32>
    %15 = vector.multi_reduction <add>, %14, %cst_9 [1] : vector<16x32xf32> to vector<16xf32>
    %16 = vector.shape_cast %15 : vector<16xf32> to vector<16x1xf32>
    %cst_10 = arith.constant 3.200000e+01 : f32
    %17 = vector.broadcast %cst_10 : f32 to vector<16x1xf32>
    %18 = arith.divf %16, %17 : vector<16x1xf32>
    %19 = vector.broadcast %11 : vector<16x1xf32> to vector<16x32xf32>
    %20 = arith.subf %7, %19 : vector<16x32xf32>
    %cst_11 = arith.constant 9.99999974E-6 : f32
    %21 = vector.broadcast %cst_11 : f32 to vector<16x1xf32>
    %22 = arith.addf %18, %21 : vector<16x1xf32>
    %23 = math.rsqrt %22 : vector<16x1xf32>
    %24 = vector.broadcast %23 : vector<16x1xf32> to vector<16x32xf32>
    %25 = arith.mulf %20, %24 : vector<16x32xf32>
    %c0_12 = arith.constant 0 : index
    %c0_13 = arith.constant 0 : index
    %26 = vector.load %arg5[%c0_12, %c0_13] : memref<1x32xf32, #tpu.memory_space<vmem>>, vector<1x32xf32>
    %27 = vector.broadcast %26 : vector<1x32xf32> to vector<16x32xf32>
    %28 = arith.mulf %25, %27 : vector<16x32xf32>
    %c0_14 = arith.constant 0 : index
    %c0_15 = arith.constant 0 : index
    %29 = vector.load %arg6[%c0_14, %c0_15] : memref<1x32xf32, #tpu.memory_space<vmem>>, vector<1x32xf32>
    %30 = vector.broadcast %29 : vector<1x32xf32> to vector<16x32xf32>
    %31 = arith.addf %28, %30 : vector<16x32xf32>
    %c0_16 = arith.constant 0 : index
    %c0_17 = arith.constant 0 : index
    %32 = vector.load %arg7[%c0_16, %c0_17] : memref<16x32xf32, #tpu.memory_space<vmem>>, vector<16x32xf32>
    tpu.vector_store %arg7[%c0_16, %c0_17], %31 {strides = array<i32>} : memref<16x32xf32, #tpu.memory_space<vmem>>, vector<16x32xf32>,
    return
  }
  func.func @transform_0(%arg0: i32) -> (i32, i32) {
    %c0_i32 = arith.constant 0 : i32
    %c0_i32_0 = arith.constant 0 : i32
    return %arg0, %c0_i32 : i32, i32
  }
  func.func @transform_1(%arg0: i32) -> (i32, i32) {
    %c0_i32 = arith.constant 0 : i32
    %c0_i32_0 = arith.constant 0 : i32
    return %arg0, %c0_i32 : i32, i32
  }
  func.func @transform_2(%arg0: i32) -> (i32, i32) {
    %c0_i32 = arith.constant 0 : i32
    %c0_i32_0 = arith.constant 0 : i32
    %c0_i32_1 = arith.constant 0 : i32
    return %c0_i32, %c0_i32_0 : i32, i32
  }
  func.func @transform_3(%arg0: i32) -> (i32, i32) {
    %c0_i32 = arith.constant 0 : i32
    %c0_i32_0 = arith.constant 0 : i32
    %c0_i32_1 = arith.constant 0 : i32
    return %c0_i32, %c0_i32_0 : i32, i32
  }
  func.func @transform_4(%arg0: i32) -> (i32, i32) {
    %c0_i32 = arith.constant 0 : i32
    %c0_i32_0 = arith.constant 0 : i32
    %c0_i32_1 = arith.constant 0 : i32
    return %c0_i32, %c0_i32_0 : i32, i32
  }
  func.func @transform_5(%arg0: i32) -> (i32, i32) {
    %c0_i32 = arith.constant 0 : i32
    %c0_i32_0 = arith.constant 0 : i32
    %c0_i32_1 = arith.constant 0 : i32
    return %c0_i32, %c0_i32_0 : i32, i32
  }
  func.func @transform_6(%arg0: i32) -> (i32, i32) {
    %c0_i32 = arith.constant 0 : i32
    %c0_i32_0 = arith.constant 0 : i32
    return %arg0, %c0_i32 : i32, i32
  }
}

module attributes {stable_mosaic.version = 11 : i64} {
  func.func @_ffn_kernel(%arg0: i32, %arg1: memref<16x32xf32, #tpu.memory_space<vmem>>, %arg2: memref<32x64xbf16, #tpu.memory_space<vmem>>, %arg3: memref<1x64xf32, #tpu.memory_space<vmem>>, %arg4: memref<64x32xbf16, #tpu.memory_space<vmem>>, %arg5: memref<1x32xf32, #tpu.memory_space<vmem>>, %arg6: memref<1x32xf32, #tpu.memory_space<vmem>>, %arg7: memref<1x32xf32, #tpu.memory_space<vmem>>, %arg8: memref<16x32xf32, #tpu.memory_space<vmem>>) attributes {dimension_semantics = [#tpu.dimension_semantics<parallel>], iteration_bounds = array<i64: 1>, scalar_prefetch = 0 : i64, scratch_operands = 0 : i64, tpu.core_type = #tpu.core_type<tc>, window_params = [{transform_indices = @transform_0, window_bounds = array<i64: 16, 32>}, {pipeline_mode = #tpu.pipeline_mode<synchronous>, transform_indices = @transform_1, window_bounds = array<i64: 32, 64>}, {pipeline_mode = #tpu.pipeline_mode<synchronous>, transform_indices = @transform_2, window_bounds = array<i64: 1, 64>}, {pipeline_mode = #tpu.pipeline_mode<synchronous>, transform_indices = @transform_3, window_bounds = array<i64: 64, 32>}, {pipeline_mode = #tpu.pipeline_mode<synchronous>, transform_indices = @transform_4, window_bounds = array<i64: 1, 32>}, {pipeline_mode = #tpu.pipeline_mode<synchronous>, transform_indices = @transform_5, window_bounds = array<i64: 1, 32>}, {pipeline_mode = #tpu.pipeline_mode<synchronous>, transform_indices = @transform_6, window_bounds = array<i64: 1, 32>}, {transform_indices = @transform_7, window_bounds = array<i64: 16, 32>}]} {
    %c0 = arith.constant 0 : index
    %c0_0 = arith.constant 0 : index
    %0 = vector.load %arg1[%c0, %c0_0] : memref<16x32xf32, #tpu.memory_space<vmem>>, vector<16x32xf32>
    %1 = arith.truncf %0 : vector<16x32xf32> to vector<16x32xbf16>
    %c0_1 = arith.constant 0 : index
    %c0_2 = arith.constant 0 : index
    %2 = vector.load %arg2[%c0_1, %c0_2] : memref<32x64xbf16, #tpu.memory_space<vmem>>, vector<32x64xbf16>
    %cst = arith.constant dense<0.000000e+00> : vector<16x64xf32>
    %3 = tpu.matmul %1, %2, %cst {dimension_numbers = #tpu.dot_dimension_numbers<[1], [0], [0], [1], [0, 0, 1, 1], [], []>} : vector<16x32xbf16>, vector<32x64xbf16>, vector<16x64xf32> -> vector<16x64xf32>
    %c0_3 = arith.constant 0 : index
    %c0_4 = arith.constant 0 : index
    %4 = vector.load %arg3[%c0_3, %c0_4] : memref<1x64xf32, #tpu.memory_space<vmem>>, vector<1x64xf32>
    %5 = vector.broadcast %4 : vector<1x64xf32> to vector<16x64xf32>
    %6 = arith.addf %3, %5 : vector<16x64xf32>
    %cst_5 = arith.constant 0.000000e+00 : f32
    %7 = vector.broadcast %cst_5 : f32 to vector<16x64xf32>
    %8 = arith.maximumf %6, %7 : vector<16x64xf32>
    %9 = arith.truncf %8 : vector<16x64xf32> to vector<16x64xbf16>
    %c0_6 = arith.constant 0 : index
    %c0_7 = arith.constant 0 : index
    %10 = vector.load %arg4[%c0_6, %c0_7] : memref<64x32xbf16, #tpu.memory_space<vmem>>, vector<64x32xbf16>
    %cst_8 = arith.constant dense<0.000000e+00> : vector<16x32xf32>
    %11 = tpu.matmul %9, %10, %cst_8 {dimension_numbers = #tpu.dot_dimension_numbers<[1], [0], [0], [1], [0, 0, 1, 1], [], []>} : vector<16x64xbf16>, vector<64x32xbf16>, vector<16x32xf32> -> vector<16x32xf32>
    %c0_9 = arith.constant 0 : index
    %c0_10 = arith.constant 0 : index
    %12 = vector.load %arg5[%c0_9, %c0_10] : memref<1x32xf32, #tpu.memory_space<vmem>>, vector<1x32xf32>
    %13 = vector.broadcast %12 : vector<1x32xf32> to vector<16x32xf32>
    %14 = arith.addf %11, %13 : vector<16x32xf32>
    %15 = arith.addf %0, %14 : vector<16x32xf32>
    %cst_11 = arith.constant dense<0.000000e+00> : vector<16xf32>
    %16 = vector.multi_reduction <add>, %15, %cst_11 [1] : vector<16x32xf32> to vector<16xf32>
    %17 = vector.shape_cast %16 : vector<16xf32> to vector<16x1xf32>
    %cst_12 = arith.constant 3.200000e+01 : f32
    %18 = vector.broadcast %cst_12 : f32 to vector<16x1xf32>
    %19 = arith.divf %17, %18 : vector<16x1xf32>
    %20 = vector.broadcast %19 : vector<16x1xf32> to vector<16x32xf32>
    %21 = arith.subf %15, %20 : vector<16x32xf32>
    %22 = arith.mulf %21, %21 : vector<16x32xf32>
    %cst_13 = arith.constant dense<0.000000e+00> : vector<16xf32>
    %23 = vector.multi_reduction <add>, %22, %cst_13 [1] : vector<16x32xf32> to vector<16xf32>
    %24 = vector.shape_cast %23 : vector<16xf32> to vector<16x1xf32>
    %cst_14 = arith.constant 3.200000e+01 : f32
    %25 = vector.broadcast %cst_14 : f32 to vector<16x1xf32>
    %26 = arith.divf %24, %25 : vector<16x1xf32>
    %27 = vector.broadcast %19 : vector<16x1xf32> to vector<16x32xf32>
    %28 = arith.subf %15, %27 : vector<16x32xf32>
    %cst_15 = arith.constant 9.99999974E-6 : f32
    %29 = vector.broadcast %cst_15 : f32 to vector<16x1xf32>
    %30 = arith.addf %26, %29 : vector<16x1xf32>
    %31 = math.rsqrt %30 : vector<16x1xf32>
    %32 = vector.broadcast %31 : vector<16x1xf32> to vector<16x32xf32>
    %33 = arith.mulf %28, %32 : vector<16x32xf32>
    %c0_16 = arith.constant 0 : index
    %c0_17 = arith.constant 0 : index
    %34 = vector.load %arg6[%c0_16, %c0_17] : memref<1x32xf32, #tpu.memory_space<vmem>>, vector<1x32xf32>
    %35 = vector.broadcast %34 : vector<1x32xf32> to vector<16x32xf32>
    %36 = arith.mulf %33, %35 : vector<16x32xf32>
    %c0_18 = arith.constant 0 : index
    %c0_19 = arith.constant 0 : index
    %37 = vector.load %arg7[%c0_18, %c0_19] : memref<1x32xf32, #tpu.memory_space<vmem>>, vector<1x32xf32>
    %38 = vector.broadcast %37 : vector<1x32xf32> to vector<16x32xf32>
    %39 = arith.addf %36, %38 : vector<16x32xf32>
    %c0_20 = arith.constant 0 : index
    %c0_21 = arith.constant 0 : index
    %40 = vector.load %arg8[%c0_20, %c0_21] : memref<16x32xf32, #tpu.memory_space<vmem>>, vector<16x32xf32>
    tpu.vector_store %arg8[%c0_20, %c0_21], %39 {strides = array<i32>} : memref<16x32xf32, #tpu.memory_space<vmem>>, vector<16x32xf32>,
    return
  }
  func.func @transform_0(%arg0: i32) -> (i32, i32) {
    %c0_i32 = arith.constant 0 : i32
    %c0_i32_0 = arith.constant 0 : i32
    return %arg0, %c0_i32 : i32, i32
  }
  func.func @transform_1(%arg0: i32) -> (i32, i32) {
    %c0_i32 = arith.constant 0 : i32
    %c0_i32_0 = arith.constant 0 : i32
    %c0_i32_1 = arith.constant 0 : i32
    return %c0_i32, %c0_i32_0 : i32, i32
  }
  func.func @transform_2(%arg0: i32) -> (i32, i32) {
    %c0_i32 = arith.constant 0 : i32
    %c0_i32_0 = arith.constant 0 : i32
    %c0_i32_1 = arith.constant 0 : i32
    return %c0_i32, %c0_i32_0 : i32, i32
  }
  func.func @transform_3(%arg0: i32) -> (i32, i32) {
    %c0_i32 = arith.constant 0 : i32
    %c0_i32_0 = arith.constant 0 : i32
    %c0_i32_1 = arith.constant 0 : i32
    return %c0_i32, %c0_i32_0 : i32, i32
  }
  func.func @transform_4(%arg0: i32) -> (i32, i32) {
    %c0_i32 = arith.constant 0 : i32
    %c0_i32_0 = arith.constant 0 : i32
    %c0_i32_1 = arith.constant 0 : i32
    return %c0_i32, %c0_i32_0 : i32, i32
  }
  func.func @transform_5(%arg0: i32) -> (i32, i32) {
    %c0_i32 = arith.constant 0 : i32
    %c0_i32_0 = arith.constant 0 : i32
    %c0_i32_1 = arith.constant 0 : i32
    return %c0_i32, %c0_i32_0 : i32, i32
  }
  func.func @transform_6(%arg0: i32) -> (i32, i32) {
    %c0_i32 = arith.constant 0 : i32
    %c0_i32_0 = arith.constant 0 : i32
    %c0_i32_1 = arith.constant 0 : i32
    return %c0_i32, %c0_i32_0 : i32, i32
  }
  func.func @transform_7(%arg0: i32) -> (i32, i32) {
    %c0_i32 = arith.constant 0 : i32
    %c0_i32_0 = arith.constant 0 : i32
    return %arg0, %c0_i32 : i32, i32
  }
}

</mosaic_0001>

<bundles_post_ra>
// kernel: deformable_decoder_layer.7
= control target key start
LH: loop header
LB: loop body
LE: loop exit
PB: predicated region body
PF: predicated region fallthrough
CT: control target
= control target key end

     0   :  { %vm47_vm0 = vcmask 261120   ;;  %s637_s8 = smov 116   ;;  %v640_v23 = vmov 1983009808   ;;  %vm106_vm1 = vcmask 1047556   ;;  %vm218_vm2 = vcmask 27648   ;;  %s960_s2 = inlined_call_operand.vmem [shape: bf16[32,48], index: 2, kind: input, shape index: {}]   ;;  %s961_s0 = inlined_call_operand.vmem [shape: f32[16,32], index: 0, kind: input, shape index: {}]   ;;  %s962_s1 = inlined_call_operand.vmem [shape: f32[16,32], index: 1, kind: input, shape index: {}]   ;;  %s963_s3 = inlined_call_operand.vmem [shape: f32[1,48], index: 3, kind: input, shape index: {}]   ;;  %s964_s4 = inlined_call_operand.vmem [shape: f32[16,32], index: 4, kind: output, shape index: {0}]   ;;  %s965_s5 = inlined_call_operand.vmem [shape: f32[16,16], index: 5, kind: output, shape index: {1}]  }
   0x1   :  { %v561_v0 = vld [vmem:[%s960_s2 + $0x8] sm:$0xff]  ;;  %v20_v1 = vld [vmem:[%s961_s0] sm:$0xff]  ;;  %v111_v24 = vunpack.c.l.s4 %v640_v23  ;;  %v641_v31 = vmov 1934713408   ;;  %s643_s11 = smov 4   ;;  %s644_s12 = smov 12  }
   0x2   :  { %v21_v2 = vld [vmem:[%s961_s0 + $0x8] sm:$0xff]  ;;  %v22_v3 = vld [vmem:[%s962_s1] sm:$0xff]  ;;  %57 = vmatpush.bf16.msra.mxu0 %v561_v0  ;;  %v135_v32 = vunpack.c.l.s4 %v641_v31  ;;  %vm531_vm3 = vcmask 31744   ;;  %vm534_vm4 = vcmask 64512   ;;  %vm537_vm5 = vcmask 97280  }
   0x3   :  { %v23_v4 = vld [vmem:[%s962_s1 + $0x8] sm:$0xff]  ;;  %v560_v5 = vld [vmem:[%s960_s2] sm:$0xff]  ;;  %v24_v6 = vadd.f32 %v22_v3, %v20_v1  ;;  %s636_s1 = smov 124   ;;  %s638_s2 = smov 120   ;;  %v702_v28 = vunpack.c.0.s8 %v111_v24  ;;  %vm540_vm6 = vcmask 130048  }
   0x4   :  { %v25_v7 = vadd.f32 %v23_v4, %v21_v2  ;;  %v571_v9 = vld [vmem:[%s963_s3] ss:$0 sm:$0xff]  ;;  %s639_s3 = smov 96   ;;  %v710_v42 = vunpack.c.0.s8 %v135_v32 }
   0x6   :  { %v26_v8 = vpack.c.bf16 %v25_v7, %v24_v6  ;;  %58 = vmatpush.bf16.msra.mxu0 %v560_v5 }
   0x9   :  { %559 = vmatmul.msk.bf16.vlgmr.msra.gmra.mxu0 %vm47_vm0, %v26_v8 }
  0x86   :  { %v60_v10 = vpop.f32.mrf.mxu0 }
  0x87   :  { %v61_v11 = vadd.f32 %v571_v9, %v60_v10 }
  0x89   :  { %65 = vst.msk [vmem:[%s964_s4] sm:$0xff] %vm47_vm0, %v61_v11  ;;  %69 = vrot.lane.b32.xlu2 %v61_v11, %s636_s1  ;;  %77 = vrot.lane.b32.xlu1 %v61_v11, %s637_s8 }
  0x8a   :  { %73 = vrot.lane.b32.xlu0 %v61_v11, %s638_s2 }
  0x8e   :  { %v62_v12 = vpop.f32.mrf.mxu0 }
  0x8f   :  { %v63_v13 = vadd.f32 %v571_v9, %v62_v12 }
  0x91   :  { %66 = vst.msk [vmem:[%s964_s4 + $0x8] sm:$0xff] %vm47_vm0, %v63_v13  ;;  %71 = vrot.lane.b32.xlu2 %v63_v13, %s636_s1  ;;  %79 = vrot.lane.b32.xlu1 %v63_v13, %s637_s8  ;;  %s642_s4 = smov 8  }
  0x92   :  { %75 = vrot.lane.b32.xlu0 %v63_v13, %s638_s2 }
  0x99   :  { %81 = vrot.lane.b32.xlu2 %v61_v11, %s639_s3 }
  0x9a   :  { %83 = vrot.lane.b32.xlu0 %v63_v13, %s639_s3 }
  0xe3   :  { %v70_v16 = vpop.permute.xlu2 %69 }
  0xeb   :  { %v72_v19 = vpop.permute.xlu2 %71 }
  0xf3   :  { %v82_v22 = vpop.permute.xlu2 %81 }
  0xf4   :  { %v108_v27 = vrot.slane %v82_v22, 4 }
  0xfb   :  { %v78_v14 = vpop.permute.xlu1 %77 }
  0xfc   :  { %v74_v15 = vpop.permute.xlu0 %73  ;;  %93 = vrot.lane.b32.xlu1 %v78_v14, %s639_s3 }
  0xfd   :  { %89 = vrot.lane.b32.xlu0 %v74_v15, %s639_s3 }
 0x103   :  { %v80_v17 = vpop.permute.xlu1 %79 }
 0x104   :  { %v76_v18 = vpop.permute.xlu0 %75  ;;  %95 = vrot.lane.b32.xlu2 %v80_v17, %s639_s3 }
 0x105   :  { %85 = vrot.lane.b32.xlu0 %v70_v16, %s639_s3  ;;  %91 = vrot.lane.b32.xlu1 %v76_v18, %s639_s3 }
 0x10c   :  { %v84_v20 = vpop.permute.xlu0 %83 }
 0x10d   :  { %87 = vrot.lane.b32.xlu1 %v72_v19, %s639_s3  ;;  %v164_v57 = vrot.slane %v84_v20, 4 }
 0x15e   :  { %v96_v46 = vpop.permute.xlu2 %95 }
 0x15f   :  { %v174_v55 = vrot.slane %v96_v46, 4 }
 0x16e   :  { %v94_v21 = vpop.permute.xlu1 %93 }
 0x16f   :  { %v90_v25 = vpop.permute.xlu0 %89  ;;  %v118_v33 = vrot.slane %v94_v21, 4 }
 0x170   :  { %v105_v26 = vrot.slane %v90_v25, 4  ;;  %v109_v30 = vsel %vm106_vm1, %v90_v25, %v108_v27 }
 0x171   :  { %v117_v35 = vperm.slane %v109_v30, %v702_v28 }
 0x172   :  { %v107_v29 = vsel %vm106_vm1, %v105_v26, %v82_v22 }
 0x173   :  { %v113_v34 = vperm.slane %v107_v29, %v702_v28  ;;  %v144_v47 = vrot.slane %v117_v35, 4 }
 0x175   :  { %v132_v43 = vrot.slane %v113_v34, 4 }
 0x177   :  { %v92_v36 = vpop.permute.xlu1 %91  ;;  %v86_v37 = vpop.permute.xlu0 %85 }
 0x178   :  { %v162_v38 = vrot.slane %v92_v36, 4  ;;  %v119_v39 = vsel %vm106_vm1, %v118_v33, %v86_v37  ;;  %v120_v40 = vrot.slane %v86_v37, 4  ;;  %v165_v1 = vsel %vm106_vm1, %v92_v36, %v164_v57 }
 0x179   :  { %v125_v41 = vperm.slane %v119_v39, %v702_v28  ;;  %v173_v10 = vperm.slane %v165_v1, %v702_v28 }
 0x17a   :  { %v163_v44 = vsel %vm106_vm1, %v162_v38, %v84_v20  ;;  %v121_v45 = vsel %vm106_vm1, %v94_v21, %v120_v40 }
 0x17b   :  { %v129_v48 = vperm.slane %v121_v45, %v702_v28  ;;  %v169_v49 = vperm.slane %v163_v44, %v702_v28  ;;  %v133_v50 = vsel %vm106_vm1, %v125_v41, %v132_v43  ;;  %v130_v51 = vrot.slane %v125_v41, 4 }
 0x17c   :  { %v718_v53 = vperm.slane %v133_v50, %v710_v42  ;;  %v200_v16 = vrot.slane %v173_v10, 4 }
 0x17d   :  { %v142_v52 = vrot.slane %v129_v48, 4  ;;  %v145_v54 = vsel %vm106_vm1, %v129_v48, %v144_v47  ;;  %v188_v2 = vrot.slane %v169_v49, 4  ;;  %v131_v4 = vsel %vm106_vm1, %v130_v51, %v113_v34 }
 0x17e   :  { %v722_v56 = vperm.slane %v145_v54, %v710_v42  ;;  %v225_v59 = vsel %vm218_vm2, %v718_v53, -inf  ;;  %v156_v9 = vrot.slane %v718_v53, 4  ;;  %v747_v12 = vperm.slane %v131_v4, %v710_v42 }
 0x17f   :  { %v88_v58 = vpop.permute.xlu1 %87  ;;  %v143_v60 = vsel %vm106_vm1, %v142_v52, %v117_v35  ;;  %226 = vmax.xlane.f32.xlu0 %v225_v59 }
 0x180   :  { %v175_v61 = vsel %vm106_vm1, %v174_v55, %v88_v58  ;;  %v176_v62 = vrot.slane %v88_v58, 4  ;;  %v237_v63 = vsel %vm218_vm2, %v722_v56, -inf  ;;  %v731_v0 = vperm.slane %v143_v60, %v710_v42 }
 0x181   :  { %v181_v3 = vperm.slane %v175_v61, %v702_v28  ;;  %238 = vmax.xlane.f32.xlu1 %v237_v63  ;;  %v752_v15 = vsel %vm106_vm1, 0.0, %v156_v9  ;;  %v219_v17 = vsel %vm218_vm2, %v747_v12, -inf  ;;  %v160_v19 = vrot.slane %v722_v56, 4 }
 0x182   :  { %v177_v5 = vsel %vm106_vm1, %v96_v46, %v176_v62  ;;  %v231_v6 = vsel %vm218_vm2, %v731_v0, -inf  ;;  %v228_v20 = vsel %vm218_vm2, %v752_v15, -inf  ;;  %v154_v23 = vrot.slane %v747_v12, 4 }
 0x183   :  { %v185_v7 = vperm.slane %v177_v5, %v702_v28  ;;  %232 = vmax.xlane.f32.xlu2 %v231_v6  ;;  %v189_v8 = vsel %vm106_vm1, %v181_v3, %v188_v2  ;;  %v766_v24 = vsel %vm106_vm1, 0.0, %v160_v19  ;;  %v186_v29 = vrot.slane %v181_v3, 4 }
 0x184   :  { %v744_v11 = vperm.slane %v189_v8, %v710_v42  ;;  %v774_v27 = vsel %vm106_vm1, 0.0, %v154_v23  ;;  %v240_v30 = vsel %vm218_vm2, %v766_v24, -inf }
 0x185   :  { %v198_v13 = vrot.slane %v185_v7, 4  ;;  %v201_v21 = vsel %vm106_vm1, %v185_v7, %v200_v16  ;;  %v222_v33 = vsel %vm218_vm2, %v774_v27, -inf  ;;  %v187_v35 = vsel %vm106_vm1, %v186_v29, %v169_v49 }
 0x186   :  { %v249_v14 = vsel %vm218_vm2, %v744_v11, -inf  ;;  %v769_v25 = vperm.slane %v201_v21, %v710_v42  ;;  %v212_v31 = vrot.slane %v744_v11, 4  ;;  %v792_v38 = vperm.slane %v187_v35, %v710_v42 }
 0x187   :  { %250 = vmax.xlane.f32.xlu0 %v249_v14  ;;  %v199_v18 = vsel %vm106_vm1, %v198_v13, %v173_v10  ;;  %v158_v49 = vrot.slane %v731_v0, 4 }
 0x188   :  { %v762_v22 = vperm.slane %v199_v18, %v710_v42  ;;  %v216_v32 = vrot.slane %v769_v25, 4  ;;  %v783_v34 = vsel %vm106_vm1, 0.0, %v212_v31  ;;  %v261_v41 = vsel %vm218_vm2, %v769_v25, -inf }
 0x189   :  { %220 = vmax.xlane.f32.xlu1 %v219_v17  ;;  %v252_v37 = vsel %vm218_vm2, %v783_v34, -inf  ;;  %v210_v43 = vrot.slane %v792_v38, 4  ;;  %v243_v45 = vsel %vm218_vm2, %v792_v38, -inf  ;;  %v814_v50 = vsel %vm106_vm1, 0.0, %v158_v49 }
 0x18a   :  { %v255_v26 = vsel %vm218_vm2, %v762_v22, -inf  ;;  %v787_v36 = vsel %vm106_vm1, 0.0, %v216_v32  ;;  %v214_v40 = vrot.slane %v762_v22, 4  ;;  %v234_v51 = vsel %vm218_vm2, %v814_v50, -inf }
 0x18b   :  { %229 = vmax.xlane.f32.xlu2 %v228_v20  ;;  %v264_v39 = vsel %vm218_vm2, %v787_v36, -inf  ;;  %v806_v46 = vsel %vm106_vm1, 0.0, %v210_v43 }
 0x18c   :  { %v801_v44 = vsel %vm106_vm1, 0.0, %v214_v40  ;;  %v246_v48 = vsel %vm218_vm2, %v806_v46, -inf }
 0x18d   :  { %v258_v47 = vsel %vm218_vm2, %v801_v44, -inf }
 0x18f   :  { %256 = vmax.xlane.f32.xlu0 %v255_v26 }
 0x191   :  { %241 = vmax.xlane.f32.xlu1 %v240_v30 }
 0x193   :  { %223 = vmax.xlane.f32.xlu2 %v222_v33 }
 0x197   :  { %253 = vmax.xlane.f32.xlu0 %v252_v37 }
 0x199   :  { %265 = vmax.xlane.f32.xlu1 %v264_v39 }
 0x19b   :  { %262 = vmax.xlane.f32.xlu2 %v261_v41 }
 0x19f   :  { %244 = vmax.xlane.f32.xlu0 %v243_v45 }
 0x1a1   :  { %259 = vmax.xlane.f32.xlu1 %v258_v47 }
 0x1a3   :  { %247 = vmax.xlane.f32.xlu2 %v246_v48 }
 0x1ab   :  { %235 = vmax.xlane.f32.xlu2 %v234_v51 }
 0x1f2   :  { %v227_v52 = vpop.xlane.xlu0 %226 }
 0x1f3   :  { %v269_v58 = vsub.f32 %v718_v53, %v227_v52 }
 0x1f4   :  { %v239_v54 = vpop.xlane.xlu1 %238 }
 0x1f5   :  { %v273_v55 = vsub.f32 %v722_v56, %v239_v54  ;;  %v287_v62 = vmul.f32 1.442695, %v269_v58 }
 0x1f6   :  { %v233_v57 = vpop.xlane.xlu2 %232 }
 0x1f7   :  { %v295_v59 = vmul.f32 1.442695, %v273_v55  ;;  %v271_v60 = vsub.f32 %v731_v0, %v233_v57 }
 0x1f9   :  { %572 = vpow2.f32 %v295_v59  ;;  %v291_v61 = vmul.f32 1.442695, %v271_v60 }
 0x1fa   :  { %v251_v63 = vpop.xlane.xlu0 %250 }
 0x1fb   :  { %574 = vpow2.f32 %v291_v61  ;;  %v277_v56 = vsub.f32 %v744_v11, %v251_v63 }
 0x1fc   :  { %v221_v1 = vpop.xlane.xlu1 %220  ;;  %576 = vpow2.f32 %v287_v62 }
 0x1fd   :  { %v267_v2 = vsub.f32 %v747_v12, %v221_v1  ;;  %v303_v7 = vmul.f32 1.442695, %v277_v56 }
 0x1fe   :  { %v230_v3 = vpop.xlane.xlu2 %229 }
 0x1ff   :  { %v822_v4 = vpop.eup %572  ;;  %v283_v5 = vmul.f32 1.442695, %v267_v2  ;;  %v270_v11 = vsub.f32 %v752_v15, %v230_v3 }
 0x200   :  { %v333_v53 = vsel %vm218_vm2, %v822_v4, 0.0 }
 0x201   :  { %v827_v6 = vpop.eup %574  ;;  %578 = vpow2.f32 %v283_v5  ;;  %334 = vadd.xlane.f32.xlu1 %v333_v53  ;;  %v289_v15 = vmul.f32 1.442695, %v270_v11 }
 0x202   :  { %v327_v0 = vsel %vm218_vm2, %v827_v6, 0.0  ;;  %v257_v8 = vpop.xlane.xlu0 %256  ;;  %v831_v10 = vpop.eup %576  ;;  %580 = vpow2.f32 %v303_v7 }
 0x203   :  { %328 = vadd.xlane.f32.xlu0 %v327_v0  ;;  %v279_v16 = vsub.f32 %v762_v22, %v257_v8  ;;  %v321_v19 = vsel %vm218_vm2, %v831_v10, 0.0 }
 0x204   :  { %v242_v9 = vpop.xlane.xlu1 %241 }
 0x205   :  { %v274_v12 = vsub.f32 %v766_v24, %v242_v9  ;;  %v307_v23 = vmul.f32 1.442695, %v279_v16 }
 0x206   :  { %v224_v13 = vpop.xlane.xlu2 %223 }
 0x207   :  { %v835_v14 = vpop.eup %578  ;;  %v297_v17 = vmul.f32 1.442695, %v274_v12  ;;  %v268_v18 = vsub.f32 %v774_v27, %v224_v13 }
 0x208   :  { %v315_v20 = vsel %vm218_vm2, %v835_v14, 0.0  ;;  %v844_v22 = vpop.eup %580 }
 0x209   :  { %582 = vpow2.f32 %v297_v17  ;;  %v285_v21 = vmul.f32 1.442695, %v268_v18  ;;  %322 = vadd.xlane.f32.xlu1 %v321_v19  ;;  %316 = vadd.xlane.f32.xlu2 %v315_v20  ;;  %v345_v32 = vsel %vm218_vm2, %v844_v22, 0.0 }
 0x20a   :  { %v254_v24 = vpop.xlane.xlu0 %253 }
 0x20b   :  { %584 = vpow2.f32 %v285_v21  ;;  %v278_v26 = vsub.f32 %v783_v34, %v254_v24 }
 0x20c   :  { %586 = vpow2.f32 %v289_v15  ;;  %v266_v34 = vpop.xlane.xlu1 %265 }
 0x20d   :  { %v305_v27 = vmul.f32 1.442695, %v278_v26  ;;  %588 = vpow2.f32 %v307_v23  ;;  %v282_v49 = vsub.f32 %v787_v36, %v266_v34 }
 0x20e   :  { %v263_v29 = vpop.xlane.xlu2 %262 }
 0x20f   :  { %v846_v30 = vpop.eup %582  ;;  %v281_v31 = vsub.f32 %v769_v25, %v263_v29  ;;  %590 = vpow2.f32 %v305_v27  ;;  %v313_v57 = vmul.f32 1.442695, %v282_v49 }
 0x210   :  { %v336_v33 = vsel %vm218_vm2, %v846_v30, 0.0 }
 0x211   :  { %v853_v35 = vpop.eup %584  ;;  %346 = vadd.xlane.f32.xlu1 %v345_v32  ;;  %337 = vadd.xlane.f32.xlu2 %v336_v33  ;;  %v311_v39 = vmul.f32 1.442695, %v281_v31 }
 0x212   :  { %v318_v37 = vsel %vm218_vm2, %v853_v35, 0.0  ;;  %v245_v40 = vpop.xlane.xlu0 %244  ;;  %v857_v41 = vpop.eup %586 }
 0x213   :  { %319 = vadd.xlane.f32.xlu0 %v318_v37  ;;  %v275_v25 = vsub.f32 %v792_v38, %v245_v40  ;;  %v860_v43 = vpop.eup %588  ;;  %592 = vpow2.f32 %v311_v39  ;;  %v324_v54 = vsel %vm218_vm2, %v857_v41, 0.0 }
 0x214   :  { %v351_v52 = vsel %vm218_vm2, %v860_v43, 0.0  ;;  %v260_v36 = vpop.xlane.xlu1 %259 }
 0x215   :  { %v299_v45 = vmul.f32 1.442695, %v275_v25  ;;  %v862_v48 = vpop.eup %590  ;;  %v280_v60 = vsub.f32 %v801_v44, %v260_v36 }
 0x216   :  { %v248_v47 = vpop.xlane.xlu2 %247  ;;  %v348_v38 = vsel %vm218_vm2, %v862_v48, 0.0 }
 0x217   :  { %v276_v51 = vsub.f32 %v806_v46, %v248_v47  ;;  %594 = vpow2.f32 %v299_v45  ;;  %v309_v56 = vmul.f32 1.442695, %v280_v60 }
 0x219   :  { %v301_v55 = vmul.f32 1.442695, %v276_v51  ;;  %352 = vadd.xlane.f32.xlu1 %v351_v52  ;;  %325 = vadd.xlane.f32.xlu2 %v324_v54  ;;  %v872_v58 = vpop.eup %592 }
 0x21a   :  { %v357_v63 = vsel %vm218_vm2, %v872_v58, 0.0 }
 0x21b   :  { %596 = vpow2.f32 %v301_v55  ;;  %349 = vadd.xlane.f32.xlu0 %v348_v38 }
 0x21c   :  { %598 = vpow2.f32 %v313_v57 }
 0x21d   :  { %v874_v46 = vpop.eup %594 }
 0x21e   :  { %v236_v59 = vpop.xlane.xlu2 %235  ;;  %v339_v62 = vsel %vm218_vm2, %v874_v46, 0.0 }
 0x21f   :  { %v272_v61 = vsub.f32 %v814_v50, %v236_v59 }
 0x221   :  { %v882_v1 = vpop.eup %596  ;;  %v293_v2 = vmul.f32 1.442695, %v272_v61  ;;  %340 = vadd.xlane.f32.xlu1 %v339_v62  ;;  %358 = vadd.xlane.f32.xlu2 %v357_v63 }
 0x222   :  { %v342_v3 = vsel %vm218_vm2, %v882_v1, 0.0  ;;  %v886_v44 = vpop.eup %598 }
 0x223   :  { %600 = vpow2.f32 %v293_v2  ;;  %343 = vadd.xlane.f32.xlu0 %v342_v3  ;;  %v360_v50 = vsel %vm218_vm2, %v886_v44, 0.0 }
 0x224   :  { %602 = vpow2.f32 %v309_v56 }
 0x229   :  { %v890_v5 = vpop.eup %600  ;;  %361 = vadd.xlane.f32.xlu2 %v360_v50 }
 0x22a   :  { %v330_v53 = vsel %vm218_vm2, %v890_v5, 0.0  ;;  %v894_v0 = vpop.eup %602 }
 0x22b   :  { %331 = vadd.xlane.f32.xlu0 %v330_v53  ;;  %v354_v7 = vsel %vm218_vm2, %v894_v0, 0.0 }
 0x231   :  { %355 = vadd.xlane.f32.xlu2 %v354_v7 }
 0x274   :  { %v335_v8 = vpop.xlane.xlu1 %334 }
 0x276   :  { %v329_v11 = vpop.xlane.xlu0 %328 }
 0x27c   :  { %v323_v9 = vpop.xlane.xlu1 %322  ;;  %v317_v12 = vpop.xlane.xlu2 %316 }
 0x284   :  { %v347_v13 = vpop.xlane.xlu1 %346  ;;  %v338_v16 = vpop.xlane.xlu2 %337 }
 0x286   :  { %v320_v17 = vpop.xlane.xlu0 %319 }
 0x28c   :  { %v326_v18 = vpop.xlane.xlu2 %325  ;;  %v353_v19 = vpop.xlane.xlu1 %352 }
 0x28d   :  { %604 = vrcp.f32 %v326_v18 }
 0x28e   :  { %v350_v20 = vpop.xlane.xlu0 %349  ;;  %606 = vrcp.f32 %v323_v9 }
 0x28f   :  { %608 = vrcp.f32 %v335_v8 }
 0x290   :  { %610 = vrcp.f32 %v320_v17 }
 0x291   :  { %612 = vrcp.f32 %v350_v20 }
 0x292   :  { %614 = vrcp.f32 %v329_v11 }
 0x293   :  { %v605_v21 = vpop.eup %604  ;;  %616 = vrcp.f32 %v317_v12 }
 0x294   :  { %v359_v15 = vpop.xlane.xlu2 %358  ;;  %v607_v23 = vpop.eup %606  ;;  %v382_v24 = vmul.f32 %v605_v21, %v857_v41 }
 0x295   :  { %v609_v26 = vpop.eup %608  ;;  %618 = vrcp.f32 %v359_v15  ;;  %v381_v31 = vmul.f32 %v607_v23, %v831_v10  ;;  %v341_v33 = vpop.xlane.xlu1 %340 }
 0x296   :  { %v344_v27 = vpop.xlane.xlu0 %343  ;;  %v611_v29 = vpop.eup %610  ;;  %v401_v32 = vrot.slane %v382_v24, 4  ;;  %v385_v37 = vmul.f32 %v609_v26, %v822_v4 }
 0x297   :  { %620 = vrcp.f32 %v344_v27  ;;  %v613_v34 = vpop.eup %612  ;;  %v380_v40 = vmul.f32 %v611_v29, %v853_v35  ;;  %v395_v45 = vrot.slane %v381_v31, 4 }
 0x298   :  { %622 = vrcp.f32 %v347_v13  ;;  %v615_v39 = vpop.eup %614  ;;  %v390_v49 = vmul.f32 %v613_v34, %v862_v48  ;;  %v407_v52 = vrot.slane %v385_v37, 4 }
 0x299   :  { %624 = vrcp.f32 %v338_v16  ;;  %v617_v25 = vpop.eup %616  ;;  %v402_v47 = vsel %vm106_vm1, %v401_v32, %v380_v40  ;;  %v383_v55 = vmul.f32 %v615_v39, %v827_v6 }
 0x29a   :  { %626 = vrcp.f32 %v341_v33  ;;  %v379_v4 = vmul.f32 %v617_v25, %v835_v14  ;;  %v406_v36 = vperm.slane %v402_v47, %v702_v28  ;;  %v457_v48 = vrot.slane %v390_v49, 4 }
 0x29b   :  { %v619_v41 = vpop.eup %618  ;;  %628 = vrcp.f32 %v353_v19  ;;  %v408_v62 = vsel %vm106_vm1, %v407_v52, %v383_v55 }
 0x29c   :  { %v362_v51 = vpop.xlane.xlu2 %361  ;;  %v396_v59 = vsel %vm106_vm1, %v395_v45, %v379_v4  ;;  %v393_v60 = vmul.f32 %v619_v41, %v872_v58  ;;  %v419_v3 = vrot.slane %v406_v36, 4  ;;  %v412_v58 = vperm.slane %v408_v62, %v702_v28 }
 0x29d   :  { %v621_v10 = vpop.eup %620  ;;  %630 = vrcp.f32 %v362_v51  ;;  %v400_v2 = vperm.slane %v396_v59, %v702_v28 }
 0x29e   :  { %v623_v54 = vpop.eup %622  ;;  %v388_v38 = vmul.f32 %v621_v10, %v882_v1  ;;  %v332_v35 = vpop.xlane.xlu0 %331  ;;  %v463_v53 = vrot.slane %v393_v60, 4  ;;  %v433_v21 = vrot.slane %v412_v58, 4 }
 0x29f   :  { %v625_v57 = vpop.eup %624  ;;  %632 = vrcp.f32 %v332_v35  ;;  %v389_v6 = vmul.f32 %v623_v54, %v844_v22  ;;  %v421_v13 = vrot.slane %v400_v2, 4  ;;  %v420_v16 = vsel %vm106_vm1, %v419_v3, %v400_v2 }
 0x2a0   :  { %v627_v61 = vpop.eup %626  ;;  %v386_v14 = vmul.f32 %v625_v57, %v846_v30  ;;  %v458_v63 = vsel %vm106_vm1, %v457_v48, %v388_v38 }
 0x2a1   :  { %v629_v1 = vpop.eup %628  ;;  %v387_v50 = vmul.f32 %v627_v61, %v874_v46  ;;  %v462_v9 = vperm.slane %v458_v63, %v702_v28  ;;  %v451_v22 = vrot.slane %v389_v6, 4  ;;  %v422_v23 = vsel %vm106_vm1, %v406_v36, %v421_v13 }
 0x2a2   :  { %v413_v12 = vrot.slane %v386_v14, 4  ;;  %v391_v30 = vmul.f32 %v629_v1, %v860_v43  ;;  %v426_v43 = vperm.slane %v420_v16, %v710_v42  ;;  %v430_v33 = vperm.slane %v422_v23, %v710_v42 }
 0x2a3   :  { %v631_v56 = vpop.eup %630  ;;  %v452_v17 = vsel %vm106_vm1, %v451_v22, %v387_v50  ;;  %v475_v15 = vrot.slane %v462_v9, 4 }
 0x2a4   :  { %v356_v7 = vpop.xlane.xlu2 %355  ;;  %v464_v46 = vsel %vm106_vm1, %v463_v53, %v391_v30  ;;  %v394_v18 = vmul.f32 %v631_v56, %v886_v44  ;;  %v456_v24 = vperm.slane %v452_v17, %v702_v28  ;;  %v445_v41 = vrot.slane %v426_v43, 4 }
 0x2a5   :  { %v633_v8 = vpop.eup %632  ;;  %634 = vrcp.f32 %v356_v7  ;;  %v468_v29 = vperm.slane %v464_v46, %v702_v28  ;;  %v449_v14 = vrot.slane %v430_v33, 4 }
 0x2a6   :  { %v384_v11 = vmul.f32 %v633_v8, %v890_v5  ;;  %v469_v31 = vrot.slane %v394_v18, 4  ;;  %v476_v37 = vsel %vm106_vm1, %v475_v15, %v456_v24  ;;  %v477_v47 = vrot.slane %v456_v24, 4 }
 0x2a7   :  { %v489_v49 = vrot.slane %v468_v29, 4  ;;  %v482_v52 = vperm.slane %v476_v37, %v710_v42 }
 0x2a8   :  { %v414_v19 = vsel %vm106_vm1, %v413_v12, %v384_v11  ;;  %v478_v35 = vsel %vm106_vm1, %v462_v9, %v477_v47 }
 0x2a9   :  { %v418_v20 = vperm.slane %v414_v19, %v702_v28  ;;  %v501_v36 = vrot.slane %v482_v52, 4  ;;  %v486_v61 = vperm.slane %v478_v35, %v710_v42 }
 0x2ab   :  { %v635_v5 = vpop.eup %634  ;;  %v434_v26 = vsel %vm106_vm1, %v418_v20, %v433_v21  ;;  %v431_v27 = vrot.slane %v418_v20, 4  ;;  %v505_v1 = vrot.slane %v486_v61, 4 }
 0x2ac   :  { %v392_v44 = vmul.f32 %v635_v5, %v894_v0  ;;  %v442_v32 = vperm.slane %v434_v26, %v710_v42 }
 0x2ad   :  { %v432_v34 = vsel %vm106_vm1, %v431_v27, %v412_v58 }
 0x2ae   :  { %v470_v39 = vsel %vm106_vm1, %v469_v31, %v392_v44  ;;  %v447_v40 = vrot.slane %v442_v32, 4  ;;  %v438_v25 = vperm.slane %v432_v34, %v710_v42  ;;  %v450_v63 = vsel %vm106_vm1, %v442_v32, %v449_v14 }
 0x2af   :  { %v474_v45 = vperm.slane %v470_v39, %v702_v28 }
 0x2b0   :  { %v448_v0 = vsel %vm106_vm1, %v447_v40, %v430_v33  ;;  %v443_v51 = vrot.slane %v438_v25, 4  ;;  %v446_v10 = vsel %vm106_vm1, %v438_v25, %v445_v41 }
 0x2b1   :  { %517 = vrot.lane.b32.xlu2 %v448_v0, %s642_s4  ;;  %509 = vrot.lane.b32.xlu0 %v446_v10, %s643_s11  ;;  %v487_v54 = vrot.slane %v474_v45, 4  ;;  %v490_v55 = vsel %vm106_vm1, %v474_v45, %v489_v49 }
 0x2b2   :  { %v498_v4 = vperm.slane %v490_v55, %v710_v42  ;;  %v444_v28 = vsel %vm106_vm1, %v443_v51, %v426_v43 }
 0x2b3   :  { %v488_v38 = vsel %vm106_vm1, %v487_v54, %v468_v29 }
 0x2b4   :  { %v494_v57 = vperm.slane %v488_v38, %v710_v42  ;;  %v503_v59 = vrot.slane %v498_v4, 4  ;;  %v506_v2 = vsel %vm106_vm1, %v498_v4, %v505_v1 }
 0x2b6   :  { %v502_v48 = vsel %vm106_vm1, %v494_v57, %v501_v36  ;;  %v499_v60 = vrot.slane %v494_v57, 4  ;;  %v504_v62 = vsel %vm106_vm1, %v503_v59, %v486_v61 }
 0x2b7   :  { %511 = vrot.lane.b32.xlu1 %v502_v48, %s643_s11 }
 0x2b8   :  { %v500_v6 = vsel %vm106_vm1, %v499_v60, %v482_v52 }
 0x2b9   :  { %519 = vrot.lane.b32.xlu0 %v504_v62, %s642_s4 }
 0x2bf   :  { %525 = vrot.lane.b32.xlu1 %v450_v63, %s644_s12 }
 0x2c1   :  { %527 = vrot.lane.b32.xlu0 %v506_v2, %s644_s12 }
 0x30b   :  { %v518_v53 = vpop.permute.xlu2 %517 }
 0x323   :  { %v510_v3 = vpop.permute.xlu0 %509 }
 0x324   :  { %v532_v42 = vsel %vm531_vm3, %v444_v28, %v510_v3 }
 0x325   :  { %v535_v58 = vsel %vm534_vm4, %v532_v42, %v518_v53 }
 0x329   :  { %v512_v56 = vpop.permute.xlu1 %511 }
 0x32a   :  { %v533_v7 = vsel %vm531_vm3, %v500_v6, %v512_v56 }
 0x32b   :  { %v520_v50 = vpop.permute.xlu0 %519 }
 0x32c   :  { %v536_v22 = vsel %vm534_vm4, %v533_v7, %v520_v50 }
 0x331   :  { %v526_v8 = vpop.permute.xlu1 %525 }
 0x332   :  { %v538_v9 = vsel %vm537_vm5, %v535_v58, %v526_v8 }
 0x333   :  { %541 = vst.msk [vmem:[%s965_s5] sm:$0xff] %vm540_vm6, %v538_v9  ;;  %v528_v12 = vpop.permute.xlu0 %527 }
 0x334   :  { %v539_v30 = vsel %vm537_vm5, %v536_v22, %v528_v12 }
 0x335   :  { %542 = vst.msk [vmem:[%s965_s5 + $0x8] sm:$0xff] %vm540_vm6, %v539_v30 }

// kernel: deformable_decoder_layer.5
= control target key start
LH: loop header
LB: loop body
LE: loop exit
PB: predicated region body
PF: predicated region fallthrough
CT: control target
= control target key end

     0   :  { %s2205_s0 = inlined_call_operand.hbm [shape: f32[2,8,32], index: 0, kind: input, shape index: {}]   ;;  %s2206_s1 = inlined_call_operand.vmem [shape: f32[2,8,32], index: 1, kind: input, shape index: {}]   ;;  %s2207_s2 = inlined_call_operand.hbm [shape: bf16[32,64], index: 2, kind: input, shape index: {}]   ;;  %s2208_s3 = inlined_call_operand.vmem [shape: f32[1,64], index: 3, kind: input, shape index: {}]   ;;  %s2209_s4 = inlined_call_operand.hbm [shape: bf16[32,32], index: 4, kind: input, shape index: {}]   ;;  %s2210_s5 = inlined_call_operand.vmem [shape: f32[1,32], index: 5, kind: input, shape index: {}]   ;;  %s2211_s6 = inlined_call_operand.hbm [shape: bf16[32,32], index: 6, kind: input, shape index: {}]   ;;  %s2212_s7 = inlined_call_operand.vmem [shape: f32[1,32], index: 7, kind: input, shape index: {}]   ;;  %s2213_s8 = inlined_call_operand.vmem [shape: f32[1,32], index: 8, kind: input, shape index: {}]   ;;  %s2214_s9 = inlined_call_operand.vmem [shape: f32[1,32], index: 9, kind: input, shape index: {}]   ;;  %s2215_s10 = inlined_call_operand.vmem [shape: f32[2,8,32], index: 10, kind: output, shape index: {}]  }
   0x1   :  { %2216 = sst [smem:[#allocation12_spill]] %s2207_s2 }
   0x2   :  { %15 = vsyncpa [#allocation3], 0 }
   0x3   :  { %17 = vsyncpa [#allocation3 + $0x1], 0 }
   0x4   :  { %18 = vsyncpa [#allocation5], 0 }
   0x5   :  { %19 = vsyncpa [#allocation8], 0  ;;  %s1828_s13 = smov 0   ;;  %s1830_s14 = smov 0  }
   0x6   :  { %s1832_s15 = smov 0   ;;  %s1834_s16 = smov 0  }
   0x7 LB: > { %s2217_s2 = sld [smem:[#allocation12_spill]]  ;;  %s1852_s20 = sadd.s32 4294967295, %s1756_s16   ;;  %s1756_s16 = sphi %s1834_s16, %s2225_s16   ;;  %s1752_s15 = sphi %s1832_s15, %s2224_s15   ;;  %s1748_s14 = sphi %s1830_s14, %s2223_s14   ;;  %s1744_s13 = sphi %s1828_s13, %s2222_s13  }
   0x8   : > { %p1420_p0 = scmp.ge.s32.totalorder %s1756_s16, 1  ;;  %p46_p1 = scmp.eq.s32.totalorder %s1852_s20, 0 }
   0x9   : > { %p276_p2 = scmp.lt.s32.totalorder %s1756_s16, 3  ;;  %s1758_s22 = smov [#allocation4]  }
   0xa   : > { %s289_s23 = sshll.u32 %s1758_s22, 4  ;;  %s304_s26 = sshll.u32 %s2209_s4, 4  ;;  %s290_s23 = int_to_ptr.vmem [resolvable:$true] %s289_s23  ;;  %s305_s26 = int_to_ptr.hbm [resolvable:$true] %s304_s26 }
   0xb   : > { %p1857_p3 = pnand %p1420_p0, %p276_p2  ;;  %s321_s30 = sshll.u32 %s2211_s6, 4  ;;  %s322_s30 = int_to_ptr.hbm [resolvable:$true] %s321_s30 }
   0xc   : > { %s1759_s11 = smov [#allocation6]   ;;  %s1760_s17 = smov 64  }
   0xd   : > { %s287_s19 = sshll.u32 %s2217_s2, 4  ;;  %p1491_p4 = pneg %p1857_p3  ;;  %s288_s19 = int_to_ptr.hbm [resolvable:$true] %s287_s19 }
   0xe   : > { %s306_s12 = sshll.u32 %s1759_s11, 4  ;;  %s1761_s18 = smov 4   ;;  %s307_s12 = int_to_ptr.vmem [resolvable:$true] %s306_s12 }
   0xf   : > { %p1868_p5 = pnand %p1491_p4, %p46_p1  ;;  %s1762_s22 = smov [#allocation7]  }
  0x10   : > { %s323_s24 = sshll.u32 %s1762_s22, 4  ;;  %s1882_s25 = sadd.s32 1, %s1756_s16   ;;  %s324_s24 = int_to_ptr.vmem [resolvable:$true] %s323_s24 }
  0x11   : > { %1494 = dma.hbm_to_vmem [thread:$0]  (!%p1868_p5), %s288_s19, 256, %s290_s23, [#allocation5], %s1760_s17, %s1760_s17, %s1761_s18  }
  0x12   : > { %1497 = dma.hbm_to_vmem [thread:$0]  (!%p1868_p5), %s305_s26, 256, %s307_s12, [#allocation5], %s1760_s17, %s1760_s17, %s1761_s18  }
  0x13   : > { %1500 = dma.hbm_to_vmem [thread:$0]  (!%p1868_p5), %s322_s30, 256, %s324_s24, [#allocation8], %s1760_s17, %s1760_s17, %s1761_s18  }
  0x14   : > { %s29_s28 = ssub.s32 %s1756_s16, %s1882_s25  ;;  %s32_s29 = sadd.s32 1, %s1752_s15 }
  0x15   : > { %p30_p6 = scmp.eq.s32.totalorder %s29_s28, 0  ;;  %p39_p7 = scmp.ne.s32.totalorder %s1752_s15, %s1748_s14 }
  0x16   : > { %p40_p8 = scmp.eq.s32.totalorder %s1756_s16, 0  ;;  %p45_p9 = scmp.ne.s32.totalorder %s1748_s14, %s1744_s13 }
  0x17   : > { %s1893_s19 = scalar_select %p30_p6, %s1752_s15, %s32_s29  }
  0x18   : > { %p41_p10 = por %p40_p8, %p39_p7  ;;  %p1897_p11 = por %p46_p1, %p45_p9 }
  0x19   : > { %p1508_p12 = scmp.lt.s32.totalorder %s1756_s16, 2  ;;  %s346_s26 = sand.u32 1, %s1752_s15  }
  0x1a   : > { %s1425_s27 = sshll.u32 %s346_s26, 3  ;;  %s1426_s30 = sshll.u32 %s1756_s16, 3 }
  0x1b   : > { %s354_s17 = scalar_lea.hbm %s2205_s0, %s1426_s30  ;;  %s350_s18 = scalar_lea.vmem [#allocation2], %s1425_s27 }
  0x1c   : > { %s358_s22 = sshll.u32 %s350_s18, 4  ;;  %s356_s24 = sshll.u32 %s354_s17, 4  ;;  %s359_s22 = int_to_ptr.vmem [resolvable:$true] %s358_s22  ;;  %s357_s24 = int_to_ptr.hbm [resolvable:$true] %s356_s24 }
  0x1d   : > { %p1907_p13 = pnand %p1508_p12, %p41_p10  ;;  %s347_s28 = scalar_lea.sflag [#allocation3], %s346_s26 }
  0x1e   : > { %s1684_s29 = sshra.s32 %s357_s24, 4  ;;  %s1691_s30 = scalar_lea.hbm %s2205_s0, 16  ;;  %s1685_s29 = int_to_ptr.hbm [resolvable:$true] %s1684_s29 }
  0x1f   : > { %s1686_s2 = scalar_lea.hbm %s1685_s29, 8  ;;  %p1688_p2 = pneg %p1907_p13 }
  0x20   : > { %p1687_p0 = scmp.ne.s32.totalorder %s1685_s29, %s1686_s2  ;;  %p1692_p6 = scmp.lt.s32.totalorder %s1685_s29, %s2205_s0 }
  0x21   : > { %p1693_p7 = scmp.lt.s32.totalorder %s1691_s30, %s1686_s2 }
  0x22   : > { %p1689_p4 = pnand %p1688_p2, %p1687_p0 }
  0x23   : > { %p1694_p8 = por %p1693_p7, %p1692_p6 }
  0x24   : > { %p1690_p5 = pneg %p1689_p4 }
  0x26   : > { %p1695_p9 = pnand %p1694_p8, %p1690_p5 }
  0x28   : > { %1698 = shalt.err (!%p1695_p9)
}
  0x29   : > { %1504 = dma.hbm_to_vmem [thread:$0]  (!%p1907_p13), %s357_s24, 128, %s359_s22, %s347_s28  }
  0x2a   : > { %374 = sbr.rel (%p1857_p3) target bundleno = 1532 (0x5fc), region = 60  ;;  %s376_s26 = sand.u32 (!%p1857_p3), 1, %s1748_s14  }
  0x2b   : > { %s1428_s17 = sshll.u32 (!%p1857_p3), %s376_s26, 3  ;;  %s377_s18 = scalar_lea.sflag (!%p1857_p3), [#allocation3], %s376_s26 }
  0x2c   : > { %s380_s16 = scalar_lea.vmem (!%p1857_p3), [#allocation2], %s1428_s17 }
  0x2f   : > { %1731 = dma.done.wait (%p1897_p11), %s377_s18, 128  }
  0x30   : > { %1733 = vsyncadd (%p1897_p11), %s377_s18, 4294967168 }
  0x31   : > { %1735 = dma.done.wait (%p46_p1), [#allocation5], 512  }
  0x32   : > { %1737 = vsyncadd (%p46_p1), [#allocation5], 4294966784 }
  0x33   : > { %1739 = dma.done.wait (%p46_p1), [#allocation8], 256  }
  0x34   : > { %1741 = vsyncadd (%p46_p1), [#allocation8], 4294967040  ;;  %p436_p3 = scmp.lt.s32.totalorder %s1852_s20, 1  ;;  %v1472_v0 = vld [vmem:[#allocation4 + $0x8] sm:$0xff]  ;;  %v1946_v1 = vld [vmem:[%s380_s16] sm:$0xff]  ;;  %vm469_vm0 = vcmask 261120  }
  0x35   : > { %v1471_v2 = vld [vmem:[#allocation4] sm:$0xff]  ;;  %479 = vmatpush.bf16.msra.mxu0 %v1472_v0  ;;  %v1569_v6 = vld [vmem:[%s2208_s3] ss:$0 sm:$0xff]  ;;  %s1763_s28 = smov 104   ;;  %s1764_s29 = smov 120   ;;  %v1474_v16 = vld [vmem:[#allocation6 + $0x8] sm:$0xff]  ;;  %v486_v18 = vpack.c.bf16 %v1946_v1, %v1946_v1 }
  0x36   : > { %s2227_s20 = smov (!%p436_p3, %s1852_s20), 1  ;;  %s1765_s27 = smov 112   ;;  %516 = vmatpush.bf16.msra.mxu1 %v1474_v16  ;;  %v1473_v17 = vld [vmem:[#allocation6] sm:$0xff]  ;;  %v1767_v20 = vmov 1983009808   ;;  %vm535_vm1 = vcmask 1047556  }
  0x37   : > { %s1432_s2 = sshll.u32 %s2227_s20, 3  ;;  %s1766_s30 = smov 96   ;;  %v540_v21 = vunpack.c.l.s4 %v1767_v20  ;;  %v1768_v28 = vmov 1934713408   ;;  %vm902_vm2 = vcmask 64512   ;;  %vm1034_vm3 = vcmask 1043456  }
  0x38   : > { %s439_s22 = scalar_lea.vmem %s2206_s1, %s1432_s2  ;;  %v564_v29 = vunpack.c.l.s4 %v1768_v28  ;;  %s1769_s26 = smov 24   ;;  %vm1231_vm4 = vcmask 130048   ;;  %vm1233_vm5 = vcmask 195584  }
  0x39   : > { %v446_v3 = vld [vmem:[%s439_s22] sm:$0xff]  ;;  %480 = vmatpush.bf16.msra.mxu0 %v1471_v2  ;;  %v1962_v25 = vunpack.c.0.s8 %v540_v21  ;;  %s1770_s17 = smov 16   ;;  %s1771_s18 = smov 8  }
  0x3a   : > { %v447_v4 = vadd.f32 %v446_v3, %v1946_v1  ;;  %517 = vmatpush.bf16.msra.mxu1 %v1473_v17  ;;  %v1971_v45 = vunpack.c.0.s8 %v564_v29 }
  0x3c   : > { %v448_v5 = vpack.c.bf16 %v447_v4, %v447_v4 }
  0x3d   : > { %1451 = vmatmul.msk.bf16.vlgmr.msra.gmra.mxu1 %vm469_vm0, %v486_v18 }
  0x3e   : > { %1442 = vmatmul.msk.bf16.vlgmr.msra.gmra.mxu0 %vm469_vm0, %v448_v5 }
  0xbb   : > { %v482_v7 = vpop.f32.mrf.mxu0 }
  0xbc   : > { %v483_v8 = vadd.f32 %v1569_v6, %v482_v7 }
  0xbe   : > { %650 = vrot.lane.b32.xlu1 %v483_v8, %s1763_s28  ;;  %646 = vrot.lane.b32.xlu0 %v483_v8, %s1764_s29  ;;  %v523_v10 = vmul.f32 0.35355338, %v483_v8 }
  0xc0   : > { %v537_v27 = vrot.slane %v523_v10, 4 }
  0xc3   : > { %v484_v9 = vpop.f32.mrf.mxu0 }
  0xc6   : > { %648 = vrot.lane.b32.xlu0 %v483_v8, %s1765_s27 }
  0xce   : > { %528 = vrot.lane.b32.xlu0 %v523_v10, %s1765_s27 }
 0x130   : > { %v647_v11 = vpop.permute.xlu0 %646  ;;  %v651_v13 = vpop.permute.xlu1 %650 }
 0x131   : > { %v1559_v12 = vpack.i.bf16 %v647_v11, %v483_v8 }
 0x133   : > { %1560 = vrot.lane.b32.xlu1 %v1559_v12, %s1766_s30 }
 0x138   : > { %v649_v14 = vpop.permute.xlu0 %648 }
 0x139   : > { %v1564_v15 = vpack.i.bf16 %v651_v13, %v649_v14 }
 0x13b   : > { %1565 = vrot.lane.b32.xlu2 %v1564_v15, %s1766_s30  ;;  %531 = vrot.lane.b32.xlu1 %v523_v10, %s1763_s28 }
 0x140   : > { %v529_v22 = vpop.permute.xlu0 %528 }
 0x141   : > { %v534_v26 = vrot.slane %v529_v22, 4  ;;  %v538_v35 = vsel %vm535_vm1, %v529_v22, %v537_v27 }
 0x142   : > { %v546_v44 = vperm.slane %v538_v35, %v1962_v25 }
 0x143   : > { %525 = vrot.lane.b32.xlu2 %v523_v10, %s1764_s29  ;;  %v536_v40 = vsel %vm535_vm1, %v534_v26, %v523_v10 }
 0x144   : > { %v542_v52 = vperm.slane %v536_v40, %v1962_v25  ;;  %v573_v63 = vrot.slane %v546_v44, 4 }
 0x146   : > { %v561_v8 = vrot.slane %v542_v52, 4 }
 0x195   : > { %v1566_v19 = vpop.permute.xlu2 %1565 }
 0x196   : > { %v1568_v23 = vunpack.i.h.bf16 %v1566_v19  ;;  %v1567_v24 = vunpack.i.l.bf16 %v1566_v19 }
 0x198   : > { %v676_v31 = vrot.slane %v1568_v23, 4  ;;  %v664_v32 = vrot.slane %v1567_v24, 4 }
 0x19d   : > { %v526_v41 = vpop.permute.xlu2 %525 }
 0x19e   : > { %v549_v53 = vrot.slane %v526_v41, 4 }
 0x1a5   : > { %v1561_v30 = vpop.permute.xlu1 %1560 }
 0x1a6   : > { %v1563_v33 = vunpack.i.h.bf16 %v1561_v30  ;;  %v1562_v34 = vunpack.i.l.bf16 %v1561_v30 }
 0x1a8   : > { %v678_v36 = vrot.slane %v1563_v33, 4  ;;  %v665_v37 = vsel %vm535_vm1, %v664_v32, %v1562_v34  ;;  %v666_v38 = vrot.slane %v1562_v34, 4  ;;  %v677_v39 = vsel %vm535_vm1, %v676_v31, %v1563_v33 }
 0x1a9   : > { %v671_v42 = vperm.slane %v665_v37, %v1962_v25  ;;  %v683_v43 = vperm.slane %v677_v39, %v1962_v25 }
 0x1aa   : > { %v667_v46 = vsel %vm535_vm1, %v1567_v24, %v666_v38  ;;  %v679_v47 = vsel %vm535_vm1, %v1568_v23, %v678_v36 }
 0x1ab   : > { %v675_v48 = vperm.slane %v667_v46, %v1962_v25  ;;  %v687_v49 = vperm.slane %v679_v47, %v1962_v25  ;;  %v688_v50 = vrot.slane %v683_v43, 4  ;;  %v690_v51 = vrot.slane %v671_v42, 4 }
 0x1ad   : > { %v689_v54 = vsel %vm535_vm1, %v688_v50, %v671_v42  ;;  %v691_v55 = vsel %vm535_vm1, %v683_v43, %v690_v51  ;;  %v700_v56 = vrot.slane %v687_v49, 4  ;;  %v702_v57 = vrot.slane %v675_v48, 4  ;;  %v532_v58 = vpop.permute.xlu1 %531 }
 0x1ae   : > { %v695_v59 = vperm.slane %v689_v54, %v1971_v45  ;;  %v699_v60 = vperm.slane %v691_v55, %v1971_v45  ;;  %v547_v61 = vrot.slane %v532_v58, 4  ;;  %v550_v62 = vsel %vm535_vm1, %v532_v58, %v549_v53 }
 0x1af   : > { %v701_v0 = vsel %vm535_vm1, %v700_v56, %v675_v48  ;;  %v703_v2 = vsel %vm535_vm1, %v687_v49, %v702_v57  ;;  %v558_v3 = vperm.slane %v550_v62, %v1962_v25 }
 0x1b0   : > { %v707_v4 = vperm.slane %v701_v0, %v1971_v45  ;;  %v711_v5 = vperm.slane %v703_v2, %v1971_v45  ;;  %v712_v6 = vrot.slane %v695_v59, 4  ;;  %v714_v7 = vrot.slane %v699_v60, 4 }
 0x1b1   : > { %v548_v9 = vsel %vm535_vm1, %v547_v61, %v526_v41  ;;  %v571_v10 = vrot.slane %v558_v3, 4  ;;  %v574_v11 = vsel %vm535_vm1, %v558_v3, %v573_v63 }
 0x1b2   : > { %v713_v12 = vsel %vm535_vm1, 0.0, %v712_v6  ;;  %v715_v13 = vsel %vm535_vm1, 0.0, %v714_v7  ;;  %v716_v14 = vrot.slane %v707_v4, 4  ;;  %v718_v15 = vrot.slane %v711_v5, 4 }
 0x1b3   : > { %v720_v16 = vsel %vm535_vm1, %v714_v7, %v695_v59  ;;  %v725_v17 = vrot.slane %v715_v13, 4  ;;  %v554_v18 = vperm.slane %v548_v9, %v1962_v25  ;;  %v572_v19 = vsel %vm535_vm1, %v571_v10, %v546_v44 }
 0x1b4   : > { %v719_v20 = vsel %vm535_vm1, 0.0, %v718_v15  ;;  %v578_v21 = vperm.slane %v572_v19, %v1971_v45  ;;  %v582_v22 = vperm.slane %v574_v11, %v1971_v45  ;;  %v717_v23 = vsel %vm535_vm1, 0.0, %v716_v14 }
 0x1b5   : > { %v736_v24 = vrot.slane %v719_v20, 4  ;;  %v559_v26 = vrot.slane %v554_v18, 4  ;;  %v562_v27 = vsel %vm535_vm1, %v554_v18, %v561_v8  ;;  %v724_v28 = vperm.slane %v720_v16, %v1962_v25 }
 0x1b6   : > { %v570_v29 = vperm.slane %v562_v27, %v1971_v45  ;;  %v587_v30 = vrot.slane %v578_v21, 4  ;;  %v589_v31 = vrot.slane %v582_v22, 4  ;;  %v726_v32 = vsel %vm535_vm1, %v725_v17, %v713_v12 }
 0x1b7   : > { %v560_v33 = vsel %vm535_vm1, %v559_v26, %v542_v52  ;;  %v730_v34 = vperm.slane %v726_v32, %v1962_v25  ;;  %v731_v35 = vsel %vm535_vm1, %v718_v15, %v707_v4  ;;  %v737_v36 = vsel %vm535_vm1, %v736_v24, %v717_v23 }
 0x1b8   : > { %v566_v37 = vperm.slane %v560_v33, %v1971_v45  ;;  %v585_v38 = vrot.slane %v570_v29, 4  ;;  %v588_v39 = vsel %vm535_vm1, 0.0, %v587_v30  ;;  %v590_v40 = vsel %vm535_vm1, 0.0, %v589_v31 }
 0x1b9   : > { %v602_v41 = vsel %vm535_vm1, %v589_v31, %v578_v21  ;;  %v607_v42 = vrot.slane %v590_v40, 4  ;;  %v735_v43 = vperm.slane %v731_v35, %v1962_v25  ;;  %v741_v44 = vperm.slane %v737_v36, %v1962_v25 }
 0x1ba   : > { %v583_v46 = vrot.slane %v566_v37, 4  ;;  %v586_v47 = vsel %vm535_vm1, 0.0, %v585_v38  ;;  %v591_v48 = vsel %vm535_vm1, %v585_v38, %v566_v37  ;;  %v606_v49 = vperm.slane %v602_v41, %v1962_v25 }
 0x1bb   : > { %v595_v50 = vperm.slane %v591_v48, %v1962_v25  ;;  %v596_v51 = vrot.slane %v586_v47, 4  ;;  %v608_v52 = vsel %vm535_vm1, %v607_v42, %v588_v39  ;;  %v744_v53 = vrot.slane %v724_v28, 4  ;;  %v519_v48 = vpop.f32.mrf.mxu1 }
 0x1bc   : > { %v584_v54 = vsel %vm535_vm1, 0.0, %v583_v46  ;;  %v612_v55 = vperm.slane %v608_v52, %v1962_v25  ;;  %v627_v56 = vrot.slane %v606_v49, 4  ;;  %v756_v57 = vrot.slane %v735_v43, 4 }
 0x1bd   : > { %v597_v58 = vsel %vm535_vm1, %v596_v51, %v584_v54  ;;  %v745_v59 = vsel %vm535_vm1, %v730_v34, %v744_v53  ;;  %v742_v60 = vrot.slane %v730_v34, 4  ;;  %v754_v61 = vrot.slane %v741_v44, 4 }
 0x1be   : > { %v753_v62 = vperm.slane %v745_v59, %v1971_v45  ;;  %v757_v63 = vsel %vm535_vm1, %v741_v44, %v756_v57  ;;  %v601_v0 = vperm.slane %v597_v58, %v1962_v25  ;;  %v615_v2 = vrot.slane %v595_v50, 4 }
 0x1bf   : > { %v765_v3 = vperm.slane %v757_v63, %v1971_v45  ;;  %v743_v4 = vsel %vm535_vm1, %v742_v60, %v724_v28  ;;  %v755_v5 = vsel %vm535_vm1, %v754_v61, %v735_v43  ;;  %v628_v6 = vsel %vm535_vm1, %v612_v55, %v627_v56 }
 0x1c0   : > { %v772_v7 = vrot.slane %v753_v62, 4  ;;  %v749_v8 = vperm.slane %v743_v4, %v1971_v45  ;;  %v761_v9 = vperm.slane %v755_v5, %v1971_v45  ;;  %v616_v10 = vsel %vm535_vm1, %v601_v0, %v615_v2 }
 0x1c1   : > { %v770_v11 = vrot.slane %v765_v3, 4  ;;  %v624_v12 = vperm.slane %v616_v10, %v1971_v45  ;;  %v636_v13 = vperm.slane %v628_v6, %v1971_v45  ;;  %v613_v14 = vrot.slane %v601_v0, 4 }
 0x1c2   : > { %v773_v15 = vsel %vm535_vm1, %v765_v3, %v772_v7  ;;  %v768_v16 = vrot.slane %v749_v8, 4  ;;  %v766_v17 = vrot.slane %v761_v9, 4  ;;  %v625_v18 = vrot.slane %v612_v55, 4 }
 0x1c3   : > { %v901_v19 = vpack.c.bf16 %v773_v15, %v773_v15  ;;  %v771_v20 = vsel %vm535_vm1, %v770_v11, %v753_v62  ;;  %v643_v21 = vrot.slane %v624_v12, 4  ;;  %v614_v22 = vsel %vm535_vm1, %v613_v14, %v595_v50  ;;  %v1570_v62 = vld [vmem:[%s2210_s5] ss:$0 sm:$0xff] }
 0x1c4   : > { %v769_v23 = vsel %vm535_vm1, %v761_v9, %v768_v16  ;;  %v900_v24 = vpack.c.bf16 %v771_v20, %v771_v20  ;;  %v767_v26 = vsel %vm535_vm1, %v766_v17, %v749_v8  ;;  %v620_v27 = vperm.slane %v614_v22, %v1971_v45 }
 0x1c5   : > { %v964_v28 = vsel %vm902_vm2, %v901_v19, 0  ;;  %v899_v29 = vpack.c.bf16 %v769_v23, %v769_v23  ;;  %v898_v30 = vpack.c.bf16 %v767_v26, %v767_v26  ;;  %v626_v32 = vsel %vm535_vm1, %v625_v18, %v606_v49  ;;  %v521_v49 = vpop.f32.mrf.mxu1 }
 0x1c6   : > { %973 = vmatpush.bf16.xpose.msrb.mxu1 %v964_v28  ;;  %v945_v31 = vsel %vm902_vm2, %v900_v24, 0  ;;  %v639_v33 = vrot.slane %v620_v27, 4  ;;  %v632_v36 = vperm.slane %v626_v32, %v1971_v45  ;;  %v641_v37 = vrot.slane %v636_v13, 4 }
 0x1c7   : > { %v926_v34 = vsel %vm902_vm2, %v899_v29, 0  ;;  %954 = vmatpush.bf16.xpose.msrb.mxu0 %v945_v31  ;;  %v907_v35 = vsel %vm902_vm2, %v898_v30, 0  ;;  %v644_v38 = vsel %vm535_vm1, %v636_v13, %v643_v21  ;;  %v520_v63 = vadd.f32 %v1570_v62, %v519_v48 }
 0x1c8   : > { %935 = vmatpush.bf16.xpose.msra.mxu3 %v926_v34  ;;  %916 = vmatpush.bf16.xpose.msra.mxu2 %v907_v35  ;;  %v642_v39 = vsel %vm535_vm1, %v641_v37, %v624_v12  ;;  %v637_v40 = vrot.slane %v632_v36, 4  ;;  %v640_v41 = vsel %vm535_vm1, %v632_v36, %v639_v33  ;;  %v897_v42 = vpack.c.bf16 %v644_v38, %v644_v38 }
 0x1c9   : > { %v896_v44 = vpack.c.bf16 %v642_v39, %v642_v39  ;;  %v895_v46 = vpack.c.bf16 %v640_v41, %v640_v41  ;;  %v786_v26 = vrot.slane %v520_v63, 4 }
 0x1ca   : > { %v638_v43 = vsel %vm535_vm1, %v637_v40, %v620_v27 }
 0x1cb   : > { %v894_v47 = vpack.c.bf16 %v638_v43, %v638_v43 }
 0x1cd   : > { %1455 = vmatmul.msk.bf16.vlgmr.msrb.gmra.mxu1 %vm902_vm2, %v897_v42 }
 0x1ce   : > { %1454 = vmatmul.msk.bf16.vlgmr.msrb.gmra.mxu0 %vm902_vm2, %v896_v44 }
 0x1cf   : > { %1453 = vmatmul.msk.bf16.vlgmr.msra.gmra.mxu3 %vm902_vm2, %v895_v46  ;;  %1452 = vmatmul.msk.bf16.vlgmr.msra.gmra.mxu2 %vm902_vm2, %v894_v47 }
 0x24a   : > { %v975_v50 = vpop.f32.mrf.mxu1 }
 0x24b   : > { %v988_v51 = vsel %vm902_vm2, %v975_v50, -inf  ;;  %v956_v52 = vpop.f32.mrf.mxu0 }
 0x24c   : > { %989 = vmax.xlane.f32.xlu2 %v988_v51  ;;  %v985_v53 = vsel %vm902_vm2, %v956_v52, -inf }
 0x24d   : > { %986 = vmax.xlane.f32.xlu1 %v985_v53 }
 0x252   : > { %v937_v54 = vpop.f32.mrf.mxu3  ;;  %v977_v55 = vpop.f32.mrf.mxu1 }
 0x253   : > { %v958_v56 = vpop.f32.mrf.mxu0  ;;  %v982_v57 = vsel %vm902_vm2, %v937_v54, -inf  ;;  %v918_v58 = vpop.f32.mrf.mxu2 }
 0x254   : > { %983 = vmax.xlane.f32.xlu0 %v982_v57  ;;  %v979_v59 = vsel %vm902_vm2, %v918_v58, -inf }
 0x255   : > { %980 = vmax.xlane.f32.xlu2 %v979_v59 }
 0x25a   : > { %v939_v60 = vpop.f32.mrf.mxu3 }
 0x25b   : > { %v920_v61 = vpop.f32.mrf.mxu2 }
 0x266   : > { %781 = vrot.lane.b32.xlu1 %v520_v63, %s1763_s28 }
 0x268   : > { %778 = vrot.lane.b32.xlu0 %v520_v63, %s1765_s27  ;;  %s443_s27 = scalar_lea.vmem %s2215_s10, %s1432_s2 }
 0x26d   : > { %775 = vrot.lane.b32.xlu2 %v520_v63, %s1764_s29 }
 0x2bf   : > { %v990_v0 = vpop.xlane.xlu2 %989 }
 0x2c0   : > { %v987_v2 = vpop.xlane.xlu1 %986  ;;  %v994_v11 = vsub.f32 %v975_v50, %v990_v0 }
 0x2c1   : > { %v993_v3 = vsub.f32 %v956_v52, %v987_v2 }
 0x2c2   : > { %v1001_v14 = vmul.f32 1.442695, %v994_v11 }
 0x2c3   : > { %v999_v4 = vmul.f32 1.442695, %v993_v3 }
 0x2c5   : > { %1574 = vpow2.f32 %v999_v4 }
 0x2c7   : > { %v984_v5 = vpop.xlane.xlu0 %983 }
 0x2c8   : > { %v992_v6 = vsub.f32 %v937_v54, %v984_v5  ;;  %v981_v7 = vpop.xlane.xlu2 %980 }
 0x2c9   : > { %v991_v8 = vsub.f32 %v918_v58, %v981_v7 }
 0x2ca   : > { %v997_v9 = vmul.f32 1.442695, %v992_v6 }
 0x2cb   : > { %v2064_v10 = vpop.eup %1574  ;;  %v995_v12 = vmul.f32 1.442695, %v991_v8 }
 0x2cc   : > { %1576 = vpow2.f32 %v997_v9  ;;  %v1009_v13 = vsel %vm902_vm2, %v2064_v10, 0.0 }
 0x2cd   : > { %1578 = vpow2.f32 %v995_v12  ;;  %1010 = vadd.xlane.f32.xlu1 %v1009_v13 }
 0x2ce   : > { %1580 = vpow2.f32 %v1001_v14 }
 0x2d0   : > { %v776_v18 = vpop.permute.xlu2 %775 }
 0x2d1   : > { %v798_v20 = vrot.slane %v776_v18, 4 }
 0x2d2   : > { %v2068_v15 = vpop.eup %1576 }
 0x2d3   : > { %v2070_v16 = vpop.eup %1578  ;;  %v1006_v17 = vsel %vm902_vm2, %v2068_v15, 0.0 }
 0x2d4   : > { %1007 = vadd.xlane.f32.xlu2 %v1006_v17  ;;  %v1003_v19 = vsel %vm902_vm2, %v2070_v16, 0.0  ;;  %v2076_v22 = vpop.eup %1580 }
 0x2d5   : > { %1004 = vadd.xlane.f32.xlu0 %v1003_v19  ;;  %v1012_v35 = vsel %vm902_vm2, %v2076_v22, 0.0 }
 0x2d8   : > { %v782_v21 = vpop.permute.xlu1 %781 }
 0x2d9   : > { %v796_v23 = vrot.slane %v782_v21, 4  ;;  %v799_v24 = vsel %vm535_vm1, %v782_v21, %v798_v20 }
 0x2da   : > { %v807_v27 = vperm.slane %v799_v24, %v1962_v25  ;;  %v779_v28 = vpop.permute.xlu0 %778 }
 0x2db   : > { %v797_v29 = vsel %vm535_vm1, %v796_v23, %v776_v18  ;;  %v784_v30 = vrot.slane %v779_v28, 4  ;;  %v787_v31 = vsel %vm535_vm1, %v779_v28, %v786_v26 }
 0x2dc   : > { %v803_v32 = vperm.slane %v797_v29, %v1962_v25  ;;  %v820_v33 = vrot.slane %v807_v27, 4  ;;  %v795_v34 = vperm.slane %v787_v31, %v1962_v25 }
 0x2dd   : > { %v785_v36 = vsel %vm535_vm1, %v784_v30, %v520_v63  ;;  %1013 = vadd.xlane.f32.xlu0 %v1012_v35 }
 0x2de   : > { %v808_v37 = vrot.slane %v803_v32, 4  ;;  %v791_v38 = vperm.slane %v785_v36, %v1962_v25  ;;  %v821_v39 = vsel %vm535_vm1, %v820_v33, %v795_v34  ;;  %v822_v40 = vrot.slane %v795_v34, 4 }
 0x2df   : > { %v827_v41 = vperm.slane %v821_v39, %v1971_v45 }
 0x2e0   : > { %v809_v42 = vsel %vm535_vm1, %v808_v37, %v791_v38  ;;  %v810_v43 = vrot.slane %v791_v38, 4  ;;  %v823_v44 = vsel %vm535_vm1, %v807_v27, %v822_v40 }
 0x2e1   : > { %v815_v46 = vperm.slane %v809_v42, %v1971_v45  ;;  %v831_v47 = vperm.slane %v823_v44, %v1971_v45  ;;  %v836_v50 = vrot.slane %v827_v41, 4 }
 0x2e2   : > { %v811_v48 = vsel %vm535_vm1, %v803_v32, %v810_v43 }
 0x2e3   : > { %v819_v49 = vperm.slane %v811_v48, %v1971_v45  ;;  %v838_v51 = vrot.slane %v831_v47, 4  ;;  %v832_v52 = vrot.slane %v815_v46, 4  ;;  %v837_v59 = vsel %vm535_vm1, 0.0, %v836_v50 }
 0x2e5   : > { %v834_v53 = vrot.slane %v819_v49, 4  ;;  %v839_v54 = vsel %vm535_vm1, 0.0, %v838_v51  ;;  %v851_v55 = vsel %vm535_vm1, %v838_v51, %v827_v41  ;;  %v833_v2 = vsel %vm535_vm1, 0.0, %v832_v52 }
 0x2e6   : > { %v855_v56 = vperm.slane %v851_v55, %v1962_v25  ;;  %v856_v57 = vrot.slane %v839_v54, 4 }
 0x2e7   : > { %v835_v58 = vsel %vm535_vm1, 0.0, %v834_v53  ;;  %v840_v60 = vsel %vm535_vm1, %v834_v53, %v815_v46 }
 0x2e8   : > { %v845_v61 = vrot.slane %v835_v58, 4  ;;  %v857_v62 = vsel %vm535_vm1, %v856_v57, %v837_v59  ;;  %v876_v63 = vrot.slane %v855_v56, 4  ;;  %v844_v0 = vperm.slane %v840_v60, %v1962_v25 }
 0x2e9   : > { %v861_v3 = vperm.slane %v857_v62, %v1962_v25 }
 0x2ea   : > { %v846_v4 = vsel %vm535_vm1, %v845_v61, %v833_v2  ;;  %v864_v5 = vrot.slane %v844_v0, 4 }
 0x2eb   : > { %v850_v6 = vperm.slane %v846_v4, %v1962_v25  ;;  %v877_v7 = vsel %vm535_vm1, %v861_v3, %v876_v63  ;;  %v874_v8 = vrot.slane %v861_v3, 4 }
 0x2ec   : > { %v885_v9 = vperm.slane %v877_v7, %v1971_v45 }
 0x2ed   : > { %v865_v11 = vsel %vm535_vm1, %v850_v6, %v864_v5  ;;  %v862_v12 = vrot.slane %v850_v6, 4  ;;  %v875_v13 = vsel %vm535_vm1, %v874_v8, %v855_v56 }
 0x2ee   : > { %v873_v14 = vperm.slane %v865_v11, %v1971_v45  ;;  %v890_v17 = vrot.slane %v885_v9, 4  ;;  %v881_v18 = vperm.slane %v875_v13, %v1971_v45 }
 0x2ef   : > { %v863_v19 = vsel %vm535_vm1, %v862_v12, %v844_v0 }
 0x2f0   : > { %v891_v20 = vsel %vm535_vm1, %v890_v17, %v873_v14  ;;  %v869_v21 = vperm.slane %v863_v19, %v1971_v45  ;;  %v886_v23 = vrot.slane %v881_v18, 4  ;;  %v892_v24 = vrot.slane %v873_v14, 4 }
 0x2f1   : > { %v1029_v26 = vpack.c.bf16 %v891_v20, %v891_v20 }
 0x2f2   : > { %v887_v27 = vsel %vm535_vm1, %v886_v23, %v869_v21  ;;  %v893_v28 = vsel %vm535_vm1, %v885_v9, %v892_v24  ;;  %v888_v29 = vrot.slane %v869_v21, 4 }
 0x2f3   : > { %v1074_v30 = vsel %vm1034_vm3, %v1029_v26, 0  ;;  %v1027_v31 = vpack.c.bf16 %v887_v27, %v887_v27  ;;  %v1030_v32 = vpack.c.bf16 %v893_v28, %v893_v28 }
 0x2f4   : > { %1083 = vmatpush.bf16.msra.mxu0 %v1074_v30  ;;  %v889_v33 = vsel %vm535_vm1, %v881_v18, %v888_v29 }
 0x2f5   : > { %v1036_v34 = vsel %vm1034_vm3, %v1027_v31, 0  ;;  %v1093_v35 = vsel %vm1034_vm3, %v1030_v32, 0  ;;  %v1028_v36 = vpack.c.bf16 %v889_v33, %v889_v33 }
 0x2f6   : > { %1045 = vmatpush.bf16.msrb.mxu2 %v1036_v34  ;;  %1102 = vmatpush.bf16.msra.mxu1 %v1093_v35 }
 0x2f7   : > { %v1055_v37 = vsel %vm1034_vm3, %v1028_v36, 0 }
 0x2f8   : > { %1064 = vmatpush.bf16.msrb.mxu3 %v1055_v37 }
 0x340   : > { %v1011_v38 = vpop.xlane.xlu1 %1010 }
 0x341   : > { %1582 = vrcp.f32 %v1011_v38 }
 0x347   : > { %v1583_v39 = vpop.eup %1582  ;;  %v1008_v40 = vpop.xlane.xlu2 %1007 }
 0x348   : > { %v1021_v41 = vmul.f32 %v1583_v39, %v2064_v10  ;;  %1584 = vrcp.f32 %v1008_v40  ;;  %v1005_v42 = vpop.xlane.xlu0 %1004 }
 0x349   : > { %1586 = vrcp.f32 %v1005_v42 }
 0x34a   : > { %v1025_v43 = vpack.c.bf16 %v1021_v41, %v1021_v41 }
 0x34c   : > { %1458 = vmatmul.msk.bf16.vlgmr.msra.gmra.mxu0 %vm902_vm2, %v1025_v43 }
 0x34e   : > { %v1585_v44 = vpop.eup %1584 }
 0x34f   : > { %v1587_v46 = vpop.eup %1586  ;;  %v1020_v47 = vmul.f32 %v1585_v44, %v2068_v15 }
 0x350   : > { %v1019_v48 = vmul.f32 %v1587_v46, %v2070_v16  ;;  %v1014_v49 = vpop.xlane.xlu0 %1013 }
 0x351   : > { %1588 = vrcp.f32 %v1014_v49  ;;  %v1024_v50 = vpack.c.bf16 %v1020_v47, %v1020_v47 }
 0x352   : > { %v1023_v51 = vpack.c.bf16 %v1019_v48, %v1019_v48 }
 0x353   : > { %1457 = vmatmul.msk.bf16.vlgmr.msrb.gmra.mxu3 %vm902_vm2, %v1024_v50 }
 0x354   : > { %1456 = vmatmul.msk.bf16.vlgmr.msrb.gmra.mxu2 %vm902_vm2, %v1023_v51 }
 0x357   : > { %v1589_v10 = vpop.eup %1588 }
 0x358   : > { %v1022_v52 = vmul.f32 %v1589_v10, %v2076_v22 }
 0x35a   : > { %v1026_v53 = vpack.c.bf16 %v1022_v52, %v1022_v52 }
 0x35c   : > { %1459 = vmatmul.msk.bf16.vlgmr.msra.gmra.mxu1 %vm902_vm2, %v1026_v53 }
 0x3c9   : > { %v1085_v54 = vpop.f32.mrf.mxu0 }
 0x3ca   : > { %v1108_v56 = vrot.slane %v1085_v54, 4 }
 0x3d1   : > { %v1087_v55 = vpop.f32.mrf.mxu0 }
 0x3d6   : > { %v1066_v15 = vpop.f32.mrf.mxu3 }
 0x3d7   : > { %v1047_v57 = vpop.f32.mrf.mxu2  ;;  %v1122_v16 = vrot.slane %v1066_v15, 4 }
 0x3d8   : > { %v1109_v58 = vsel %vm535_vm1, %v1108_v56, %v1047_v57  ;;  %v1110_v59 = vrot.slane %v1047_v57, 4 }
 0x3d9   : > { %v1115_v60 = vperm.slane %v1109_v58, %v1962_v25  ;;  %v1104_v61 = vpop.f32.mrf.mxu1 }
 0x3da   : > { %v1111_v62 = vsel %vm535_vm1, %v1085_v54, %v1110_v59  ;;  %v1120_v63 = vrot.slane %v1104_v61, 4  ;;  %v1123_v22 = vsel %vm535_vm1, %v1104_v61, %v1122_v16  ;;  %v1475_v61 = vld [vmem:[#allocation7] sm:$0xff] }
 0x3db   : > { %v1119_v0 = vperm.slane %v1111_v62, %v1962_v25  ;;  %v1131_v2 = vperm.slane %v1123_v22, %v1962_v25  ;;  %v1134_v4 = vrot.slane %v1115_v60, 4 }
 0x3dc   : > { %v1121_v3 = vsel %vm535_vm1, %v1120_v63, %v1066_v15 }
 0x3dd   : > { %v1146_v5 = vrot.slane %v1119_v0, 4  ;;  %v1127_v6 = vperm.slane %v1121_v3, %v1962_v25  ;;  %v1144_v7 = vrot.slane %v1131_v2, 4 }
 0x3de   : > { %v1068_v8 = vpop.f32.mrf.mxu3 }
 0x3df   : > { %v1132_v9 = vrot.slane %v1127_v6, 4  ;;  %v1135_v11 = vsel %vm535_vm1, %v1127_v6, %v1134_v4  ;;  %v1145_v12 = vsel %vm535_vm1, %v1144_v7, %v1119_v0  ;;  %v1147_v13 = vsel %vm535_vm1, %v1131_v2, %v1146_v5  ;;  %v1049_v14 = vpop.f32.mrf.mxu2  ;;  %v1571_v4 = vld [vmem:[%s2212_s7] ss:$0 sm:$0xff] }
 0x3e0   : > { %v1143_v17 = vperm.slane %v1135_v11, %v1971_v45  ;;  %v1151_v18 = vperm.slane %v1145_v12, %v1971_v45  ;;  %v1155_v19 = vperm.slane %v1147_v13, %v1971_v45  ;;  %v1772_v11 = vmov 32.0  }
 0x3e1   : > { %v1133_v20 = vsel %vm535_vm1, %v1132_v9, %v1115_v60  ;;  %v1106_v21 = vpop.f32.mrf.mxu1  ;;  %v1476_v60 = vld [vmem:[#allocation7 + $0x8] sm:$0xff]  ;;  %1590 = vrcp.f32 %v1772_v11 }
 0x3e2   : > { %v1139_v23 = vperm.slane %v1133_v20, %v1971_v45  ;;  %v1158_v24 = vrot.slane %v1143_v17, 4  ;;  %v1160_v26 = vrot.slane %v1151_v18, 4  ;;  %v1162_v27 = vrot.slane %v1155_v19, 4  ;;  %1265 = vmatpush.bf16.msra.mxu2 %v1476_v60 }
 0x3e4   : > { %v1156_v28 = vrot.slane %v1139_v23, 4  ;;  %v1159_v29 = vsel %vm535_vm1, 0.0, %v1158_v24  ;;  %v1163_v30 = vsel %vm535_vm1, 0.0, %v1162_v27  ;;  %v1175_v32 = vsel %vm535_vm1, %v1162_v27, %v1151_v18 }
 0x3e5   : > { %v1169_v31 = vrot.slane %v1159_v29, 4  ;;  %v1180_v33 = vrot.slane %v1163_v30, 4  ;;  %v1164_v34 = vsel %vm535_vm1, %v1158_v24, %v1139_v23  ;;  %v1161_v35 = vsel %vm535_vm1, 0.0, %v1160_v26 }
 0x3e6   : > { %v1157_v36 = vsel %vm535_vm1, 0.0, %v1156_v28  ;;  %v1168_v37 = vperm.slane %v1164_v34, %v1962_v25  ;;  %v1179_v38 = vperm.slane %v1175_v32, %v1962_v25  ;;  %1266 = vmatpush.bf16.msra.mxu2 %v1475_v61 }
 0x3e7   : > { %v1170_v39 = vsel %vm535_vm1, %v1169_v31, %v1157_v36  ;;  %v1181_v40 = vsel %vm535_vm1, %v1180_v33, %v1161_v35  ;;  %v1591_v12 = vpop.eup %1590  ;;  %v1572_v35 = vld [vmem:[%s2213_s8] ss:$0 sm:$0xff] }
 0x3e8   : > { %v1174_v41 = vperm.slane %v1170_v39, %v1962_v25  ;;  %v1185_v42 = vperm.slane %v1181_v40, %v1962_v25  ;;  %v1188_v43 = vrot.slane %v1168_v37, 4  ;;  %v1200_v44 = vrot.slane %v1179_v38, 4 }
 0x3e9   : > { %v1277_v13 = vmul.f32 32.0, %v1591_v12  ;;  %vm1281_vm6 = vweird.f32 %v1591_v12 }
 0x3ea   : > { %v1189_v46 = vsel %vm535_vm1, %v1174_v41, %v1188_v43  ;;  %v1201_v47 = vsel %vm535_vm1, %v1185_v42, %v1200_v44  ;;  %v1186_v48 = vrot.slane %v1174_v41, 4  ;;  %v1198_v49 = vrot.slane %v1185_v42, 4 }
 0x3eb   : > { %v1197_v50 = vperm.slane %v1189_v46, %v1971_v45  ;;  %v1209_v51 = vperm.slane %v1201_v47, %v1971_v45  ;;  %v1278_v14 = vsub.f32 1.0, %v1277_v13 }
 0x3ec   : > { %v1187_v10 = vsel %vm535_vm1, %v1186_v48, %v1168_v37  ;;  %v1199_v52 = vsel %vm535_vm1, %v1198_v49, %v1179_v38  ;;  %v1573_v37 = vld [vmem:[%s2214_s9] ss:$0 sm:$0xff] }
 0x3ed   : > { %v1216_v53 = vrot.slane %v1197_v50, 4  ;;  %v1214_v54 = vrot.slane %v1209_v51, 4  ;;  %v1193_v25 = vperm.slane %v1187_v10, %v1971_v45  ;;  %v1205_v55 = vperm.slane %v1199_v52, %v1971_v45 }
 0x3ee   : > { %v1279_v17 = vmul.f32 %v1591_v12, %v1278_v14 }
 0x3ef   : > { %v1217_v56 = vsel %vm535_vm1, %v1209_v51, %v1216_v53  ;;  %v1215_v15 = vsel %vm535_vm1, %v1214_v54, %v1197_v50  ;;  %v1210_v57 = vrot.slane %v1205_v55, 4  ;;  %v1212_v16 = vrot.slane %v1193_v25, 4 }
 0x3f0   : > { %1227 = vrot.lane.b32.xlu0 %v1217_v56, %s1769_s26  ;;  %1223 = vrot.lane.b32.xlu1 %v1215_v15, %s1770_s17  ;;  %v1280_v18 = vadd.f32 %v1591_v12, %v1279_v17 }
 0x3f1   : > { %v1213_v58 = vsel %vm535_vm1, %v1205_v55, %v1212_v16  ;;  %v1211_v59 = vsel %vm535_vm1, %v1210_v57, %v1193_v25 }
 0x3f2   : > { %1219 = vrot.lane.b32.xlu2 %v1213_v58, %s1771_s18  ;;  %v1282_v19 = vsel %vm1281_vm6, %v1591_v12, %v1280_v18 }
 0x44c   : > { %v1220_v45 = vpop.permute.xlu2 %1219 }
 0x44d   : > { %v1230_v62 = vsel %vm902_vm2, %v1211_v59, %v1220_v45 }
 0x462   : > { %v1228_v63 = vpop.permute.xlu0 %1227  ;;  %v1224_v22 = vpop.permute.xlu1 %1223 }
 0x463   : > { %v1232_v0 = vsel %vm1231_vm4, %v1230_v62, %v1224_v22 }
 0x464   : > { %v1234_v2 = vsel %vm1233_vm5, %v1232_v0, %v1228_v63 }
 0x465   : > { %v1235_v3 = vpack.c.bf16 %v1234_v2, %v1234_v2 }
 0x467   : > { %1468 = vmatmul.msk.bf16.vlgmr.msra.gmra.mxu2 %vm469_vm0, %v1235_v3 }
 0x4ea   : > { %v1268_v5 = vpop.f32.mrf.mxu2 }
 0x4eb   : > { %v1269_v6 = vadd.f32 %v1571_v4, %v1268_v5 }
 0x4ed   : > { %v1272_v7 = vadd.f32 %v1269_v6, %v1946_v1 }
 0x4ef   : > { %v1273_v8 = vsel %vm469_vm0, %v1272_v7, 0.0 }
 0x4f0   : > { %1274 = vadd.xlane.f32.xlu2 %v1273_v8 }
 0x4f2   : > { %v1270_v9 = vpop.f32.mrf.mxu2 }
 0x563   : > { %v1275_v20 = vpop.xlane.xlu2 %1274 }
 0x564   : > { %v1283_v21 = vmul.f32 %v1282_v19, %v1275_v20 }
 0x566   : > { %v1284_v23 = vsub.f32 %v1272_v7, %v1283_v21 }
 0x568   : > { %v1285_v24 = vmul.f32 %v1284_v23, %v1284_v23 }
 0x56a   : > { %v1286_v26 = vsel %vm469_vm0, %v1285_v24, 0.0 }
 0x56b   : > { %1287 = vadd.xlane.f32.xlu0 %v1286_v26 }
 0x5de   : > { %v1288_v1 = vpop.xlane.xlu0 %1287 }
 0x5df   : > { %v1289_v27 = vmul.f32 %v1288_v1, %v1282_v19 }
 0x5e1   : > { %v1290_v28 = vadd.f32 1e-05, %v1289_v27 }
 0x5e3   : > { %1592 = vrsqrt.f32 %v1290_v28  ;;  %vm1297_vm8 = vweird.f32 %v1290_v28 }
 0x5e9   : > { %v1593_v29 = vpop.eup %1592 }
 0x5ea   : > { %v1292_v30 = vmul.f32 %v1593_v29, %v1290_v28  ;;  %vm1298_vm7 = vweird.f32 %v1593_v29 }
 0x5eb   : > { %vm1299_vm9 = vmor %vm1297_vm8, %vm1298_vm7 }
 0x5ec   : > { %v1293_v31 = vmul.f32 %v1593_v29, %v1292_v30 }
 0x5ee   : > { %v1294_v32 = vmul.f32 0.5, %v1293_v31 }
 0x5f0   : > { %v1295_v33 = vsub.f32 1.5, %v1294_v32 }
 0x5f2   : > { %v1296_v34 = vmul.f32 %v1593_v29, %v1295_v33 }
 0x5f4   : > { %v1300_v36 = vsel %vm1299_vm9, %v1593_v29, %v1296_v34 }
 0x5f5   : > { %v1301_v38 = vmul.f32 %v1300_v36, %v1284_v23 }
 0x5f7   : > { %v1306_v39 = vmul.f32 %v1572_v35, %v1301_v38 }
 0x5f9   : > { %v1311_v40 = vadd.f32 %v1573_v37, %v1306_v39 }
 0x5fb   : > { %1312 = vst.msk [vmem:[%s443_s27] sm:$0xff] %vm469_vm0, %v1311_v40 }
 0x5fc PF: > { %p22_p1 = scmp.ge.s32.totalorder %s1882_s25, 4   ;;  %s2222_s13 = smov %s1748_s14 }
 0x5fd   : > { %s2223_s14 = smov %s1752_s15  ;;  %s2224_s15 = smov %s1893_s19 }
 0x5fe   : > { %s2225_s16 = smov %s1882_s25  ;;  %24 = sbr.rel (!%p22_p1) target bundleno = 7 (0x7), region = 115 }
 0x603   :  { %1332 = vsyncpa [#allocation3], 1 }
 0x604   :  { %1334 = vsyncpa [#allocation3 + $0x1], 1 }
 0x605   :  { %1335 = vsyncpa [#allocation5], 1 }
 0x606   :  { %1336 = vsyncpa [#allocation8], 1 }

// kernel: deformable_decoder_layer.6
= control target key start
LH: loop header
LB: loop body
LE: loop exit
PB: predicated region body
PF: predicated region fallthrough
CT: control target
= control target key end

     0   :  { %vm65_vm0 = vcmask 261120   ;;  %vm175_vm1 = vcmask 257024   ;;  %s428_s1 = inlined_call_operand.vmem [shape: bf16[32,32], index: 1, kind: input, shape index: {}]   ;;  %s429_s0 = inlined_call_operand.vmem [shape: f32[160,32], index: 0, kind: input, shape index: {}]   ;;  %s430_s2 = inlined_call_operand.vmem [shape: f32[1,32], index: 2, kind: input, shape index: {}]   ;;  %s431_s3 = inlined_call_operand.vmem [shape: bf16[160,32], index: 3, kind: output, shape index: {}]  }
   0x1   :  { %v219_v0 = vld [vmem:[%s428_s1 + $0x8] sm:$0xff]  ;;  %v218_v1 = vld [vmem:[%s428_s1] sm:$0xff]  ;;  %v21_v4 = vld [vmem:[%s429_s0 + $0x30] sm:$0xff] }
   0x2   :  { %v15_v2 = vld [vmem:[%s429_s0] sm:$0xff]  ;;  %102 = vmatpush.bf16.msra.mxu0 %v219_v0  ;;  %220 = vmatpush.bf16.msra.mxu1 %v219_v0  ;;  %v16_v3 = vld [vmem:[%s429_s0 + $0x8] sm:$0xff]  ;;  %v22_v5 = vld [vmem:[%s429_s0 + $0x38] sm:$0xff] }
   0x3   :  { %222 = vmatpush.bf16.msra.mxu3 %v219_v0  ;;  %v29_v6 = vld [vmem:[%s429_s0 + $0x70] sm:$0xff]  ;;  %v30_v7 = vld [vmem:[%s429_s0 + $0x78] sm:$0xff]  ;;  %221 = vmatpush.bf16.msra.mxu2 %v219_v0  ;;  %v27_v8 = vld [vmem:[%s429_s0 + $0x60] sm:$0xff]  ;;  %v35_v9 = vpack.c.bf16 %v16_v3, %v15_v2  ;;  %v38_v10 = vpack.c.bf16 %v22_v5, %v21_v4 }
   0x4   :  { %v28_v11 = vld [vmem:[%s429_s0 + $0x68] sm:$0xff]  ;;  %v42_v12 = vpack.c.bf16 %v30_v7, %v29_v6  ;;  %v17_v14 = vld [vmem:[%s429_s0 + $0x10] sm:$0xff]  ;;  %v18_v15 = vld [vmem:[%s429_s0 + $0x18] sm:$0xff] }
   0x5   :  { %v41_v13 = vpack.c.bf16 %v28_v11, %v27_v8  ;;  %v23_v16 = vld [vmem:[%s429_s0 + $0x40] sm:$0xff]  ;;  %v24_v17 = vld [vmem:[%s429_s0 + $0x48] sm:$0xff]  ;;  %v36_v20 = vpack.c.bf16 %v18_v15, %v17_v14  ;;  %v25_v25 = vld [vmem:[%s429_s0 + $0x50] sm:$0xff] }
   0x6   :  { %103 = vmatpush.bf16.msra.mxu0 %v218_v1  ;;  %223 = vmatpush.bf16.msra.mxu1 %v218_v1  ;;  %v31_v18 = vld [vmem:[%s429_s0 + $0x80] sm:$0xff]  ;;  %v32_v19 = vld [vmem:[%s429_s0 + $0x88] sm:$0xff]  ;;  %v39_v21 = vpack.c.bf16 %v24_v17, %v23_v16  ;;  %v26_v26 = vld [vmem:[%s429_s0 + $0x58] sm:$0xff] }
   0x7   :  { %225 = vmatpush.bf16.msra.mxu3 %v218_v1  ;;  %224 = vmatpush.bf16.msra.mxu2 %v218_v1  ;;  %v43_v22 = vpack.c.bf16 %v32_v19, %v31_v18  ;;  %v19_v23 = vld [vmem:[%s429_s0 + $0x20] sm:$0xff]  ;;  %v20_v24 = vld [vmem:[%s429_s0 + $0x28] sm:$0xff]  ;;  %v33_v27 = vld [vmem:[%s429_s0 + $0x90] sm:$0xff]  ;;  %v40_v30 = vpack.c.bf16 %v26_v26, %v25_v25 }
   0x8   :  { %v34_v28 = vld [vmem:[%s429_s0 + $0x98] sm:$0xff]  ;;  %v37_v29 = vpack.c.bf16 %v20_v24, %v19_v23  ;;  %v326_v32 = vld [vmem:[%s430_s2] ss:$0 sm:$0xff] }
   0x9   :  { %208 = vmatmul.msk.bf16.vlgmr.msra.gmra.mxu0 %vm65_vm0, %v35_v9  ;;  %211 = vmatmul.msk.bf16.vlgmr.msra.gmra.mxu1 %vm65_vm0, %v38_v10  ;;  %v44_v31 = vpack.c.bf16 %v34_v28, %v33_v27 }
   0xa   :  { %215 = vmatmul.msk.bf16.vlgmr.msra.gmra.mxu3 %vm65_vm0, %v42_v12  ;;  %214 = vmatmul.msk.bf16.vlgmr.msra.gmra.mxu2 %vm65_vm0, %v41_v13 }
  0x19   :  { %209 = vmatmul.msk.bf16.gmra.mxu0 %vm65_vm0, %v36_v20  ;;  %212 = vmatmul.msk.bf16.gmra.mxu1 %vm65_vm0, %v39_v21 }
  0x1a   :  { %216 = vmatmul.msk.bf16.gmra.mxu3 %vm65_vm0, %v43_v22 }
  0x29   :  { %210 = vmatmul.msk.bf16.gmra.mxu0 %vm65_vm0, %v37_v29  ;;  %213 = vmatmul.msk.bf16.gmra.mxu1 %vm65_vm0, %v40_v30 }
  0x2a   :  { %217 = vmatmul.msk.bf16.gmra.mxu3 %vm65_vm0, %v44_v31 }
  0x86   :  { %v105_v33 = vpop.f32.mrf.mxu0  ;;  %v120_v34 = vpop.f32.mrf.mxu1 }
  0x87   :  { %v106_v35 = vadd.f32 %v326_v32, %v105_v33  ;;  %v121_v36 = vadd.f32 %v326_v32, %v120_v34 }
  0x89   :  { %v155_v37 = vpack.c.bf16 %v106_v35, %v106_v35  ;;  %v161_v38 = vpack.c.bf16 %v121_v36, %v121_v36 }
  0x8b   :  { %176 = vst.msk [vmem:[%s431_s3] sm:$0xf] %vm175_vm1, %v155_v37 }
  0x8c   :  { %182 = vst.msk [vmem:[%s431_s3 + $0x18] sm:$0xf] %vm175_vm1, %v161_v38 }
  0x8d   :  { %v140_v39 = vpop.f32.mrf.mxu3  ;;  %v135_v40 = vpop.f32.mrf.mxu2 }
  0x8e   :  { %v141_v41 = vadd.f32 %v326_v32, %v140_v39  ;;  %v107_v42 = vpop.f32.mrf.mxu0  ;;  %v122_v43 = vpop.f32.mrf.mxu1  ;;  %v136_v44 = vadd.f32 %v326_v32, %v135_v40 }
  0x8f   :  { %v108_v45 = vadd.f32 %v326_v32, %v107_v42  ;;  %v123_v46 = vadd.f32 %v326_v32, %v122_v43 }
  0x90   :  { %v169_v47 = vpack.c.bf16 %v141_v41, %v141_v41  ;;  %v167_v50 = vpack.c.bf16 %v136_v44, %v136_v44 }
  0x91   :  { %v156_v48 = vpack.c.bf16 %v108_v45, %v108_v45  ;;  %v162_v49 = vpack.c.bf16 %v123_v46, %v123_v46 }
  0x92   :  { %190 = vst.msk [vmem:[%s431_s3 + $0x38] sm:$0xf] %vm175_vm1, %v169_v47 }
  0x93   :  { %177 = vst.msk [vmem:[%s431_s3 + $0x4] sm:$0xf] %vm175_vm1, %v156_v48 }
  0x94   :  { %183 = vst.msk [vmem:[%s431_s3 + $0x1c] sm:$0xf] %vm175_vm1, %v162_v49 }
  0x95   :  { %v142_v51 = vpop.f32.mrf.mxu3  ;;  %188 = vst.msk [vmem:[%s431_s3 + $0x30] sm:$0xf] %vm175_vm1, %v167_v50  ;;  %v137_v52 = vpop.f32.mrf.mxu2 }
  0x96   :  { %v143_v53 = vadd.f32 %v326_v32, %v142_v51  ;;  %v110_v54 = vpop.f32.mrf.mxu0  ;;  %v125_v55 = vpop.f32.mrf.mxu1  ;;  %v138_v56 = vadd.f32 %v326_v32, %v137_v52 }
  0x97   :  { %v111_v57 = vadd.f32 %v326_v32, %v110_v54  ;;  %v126_v58 = vadd.f32 %v326_v32, %v125_v55 }
  0x98   :  { %v170_v59 = vpack.c.bf16 %v143_v53, %v143_v53  ;;  %v168_v62 = vpack.c.bf16 %v138_v56, %v138_v56 }
  0x99   :  { %v157_v60 = vpack.c.bf16 %v111_v57, %v111_v57  ;;  %v163_v61 = vpack.c.bf16 %v126_v58, %v126_v58 }
  0x9a   :  { %191 = vst.msk [vmem:[%s431_s3 + $0x3c] sm:$0xf] %vm175_vm1, %v170_v59 }
  0x9b   :  { %178 = vst.msk [vmem:[%s431_s3 + $0x8] sm:$0xf] %vm175_vm1, %v157_v60 }
  0x9c   :  { %184 = vst.msk [vmem:[%s431_s3 + $0x20] sm:$0xf] %vm175_vm1, %v163_v61 }
  0x9d   :  { %v145_v63 = vpop.f32.mrf.mxu3  ;;  %189 = vst.msk [vmem:[%s431_s3 + $0x34] sm:$0xf] %vm175_vm1, %v168_v62 }
  0x9e   :  { %v146_v0 = vadd.f32 %v326_v32, %v145_v63  ;;  %v112_v1 = vpop.f32.mrf.mxu0  ;;  %v127_v2 = vpop.f32.mrf.mxu1 }
  0x9f   :  { %v113_v3 = vadd.f32 %v326_v32, %v112_v1  ;;  %v128_v4 = vadd.f32 %v326_v32, %v127_v2 }
  0xa0   :  { %v171_v5 = vpack.c.bf16 %v146_v0, %v146_v0 }
  0xa1   :  { %v158_v6 = vpack.c.bf16 %v113_v3, %v113_v3  ;;  %v164_v7 = vpack.c.bf16 %v128_v4, %v128_v4 }
  0xa2   :  { %192 = vst.msk [vmem:[%s431_s3 + $0x40] sm:$0xf] %vm175_vm1, %v171_v5 }
  0xa3   :  { %179 = vst.msk [vmem:[%s431_s3 + $0xc] sm:$0xf] %vm175_vm1, %v158_v6 }
  0xa4   :  { %185 = vst.msk [vmem:[%s431_s3 + $0x24] sm:$0xf] %vm175_vm1, %v164_v7 }
  0xa5   :  { %v147_v8 = vpop.f32.mrf.mxu3 }
  0xa6   :  { %v148_v9 = vadd.f32 %v326_v32, %v147_v8  ;;  %v115_v10 = vpop.f32.mrf.mxu0  ;;  %v130_v11 = vpop.f32.mrf.mxu1 }
  0xa7   :  { %v116_v12 = vadd.f32 %v326_v32, %v115_v10  ;;  %v131_v13 = vadd.f32 %v326_v32, %v130_v11 }
  0xa8   :  { %v172_v14 = vpack.c.bf16 %v148_v9, %v148_v9 }
  0xa9   :  { %v159_v15 = vpack.c.bf16 %v116_v12, %v116_v12  ;;  %v165_v16 = vpack.c.bf16 %v131_v13, %v131_v13 }
  0xaa   :  { %193 = vst.msk [vmem:[%s431_s3 + $0x44] sm:$0xf] %vm175_vm1, %v172_v14 }
  0xab   :  { %180 = vst.msk [vmem:[%s431_s3 + $0x10] sm:$0xf] %vm175_vm1, %v159_v15 }
  0xac   :  { %186 = vst.msk [vmem:[%s431_s3 + $0x28] sm:$0xf] %vm175_vm1, %v165_v16 }
  0xad   :  { %v150_v17 = vpop.f32.mrf.mxu3 }
  0xae   :  { %v151_v18 = vadd.f32 %v326_v32, %v150_v17  ;;  %v117_v19 = vpop.f32.mrf.mxu0  ;;  %v132_v20 = vpop.f32.mrf.mxu1 }
  0xaf   :  { %v118_v21 = vadd.f32 %v326_v32, %v117_v19  ;;  %v133_v22 = vadd.f32 %v326_v32, %v132_v20 }
  0xb0   :  { %v173_v23 = vpack.c.bf16 %v151_v18, %v151_v18 }
  0xb1   :  { %v160_v24 = vpack.c.bf16 %v118_v21, %v118_v21  ;;  %v166_v25 = vpack.c.bf16 %v133_v22, %v133_v22 }
  0xb2   :  { %194 = vst.msk [vmem:[%s431_s3 + $0x48] sm:$0xf] %vm175_vm1, %v173_v23 }
  0xb3   :  { %181 = vst.msk [vmem:[%s431_s3 + $0x14] sm:$0xf] %vm175_vm1, %v160_v24 }
  0xb4   :  { %187 = vst.msk [vmem:[%s431_s3 + $0x2c] sm:$0xf] %vm175_vm1, %v166_v25 }
  0xb5   :  { %v152_v26 = vpop.f32.mrf.mxu3 }
  0xb6   :  { %v153_v27 = vadd.f32 %v326_v32, %v152_v26 }
  0xb8   :  { %v174_v28 = vpack.c.bf16 %v153_v27, %v153_v27 }
  0xba   :  { %195 = vst.msk [vmem:[%s431_s3 + $0x4c] sm:$0xf] %vm175_vm1, %v174_v28 }

// kernel: deformable_decoder_layer.8
= control target key start
LH: loop header
LB: loop body
LE: loop exit
PB: predicated region body
PF: predicated region fallthrough
CT: control target
= control target key end

     0   :  { %vm51_vm0 = vcmask 261120   ;;  %v168_v14 = vmov 32.0   ;;  %s241_s2 = inlined_call_operand.vmem [shape: bf16[32,32], index: 2, kind: input, shape index: {}]   ;;  %s242_s3 = inlined_call_operand.vmem [shape: f32[1,32], index: 3, kind: input, shape index: {}]   ;;  %s243_s0 = inlined_call_operand.vmem [shape: bf16[16,32], index: 0, kind: input, shape index: {}]   ;;  %s244_s1 = inlined_call_operand.vmem [shape: f32[16,32], index: 1, kind: input, shape index: {}]   ;;  %s245_s4 = inlined_call_operand.vmem [shape: f32[1,32], index: 4, kind: input, shape index: {}]   ;;  %s246_s5 = inlined_call_operand.vmem [shape: f32[1,32], index: 5, kind: input, shape index: {}]   ;;  %s247_s6 = inlined_call_operand.vmem [shape: f32[16,32], index: 6, kind: output, shape index: {}]  }
   0x1   :  { %v157_v0 = vld [vmem:[%s241_s2 + $0x8] sm:$0xff]  ;;  %v156_v1 = vld [vmem:[%s241_s2] sm:$0xff]  ;;  %162 = vrcp.f32 %v168_v14 }
   0x2   :  { %61 = vmatpush.bf16.msra.mxu0 %v157_v0  ;;  %v155_v2 = vld [vmem:[%s243_s0] sm:$0xff]  ;;  %v70_v10 = vld [vmem:[%s244_s1 + $0x8] sm:$0xff] }
   0x3   :  { %v159_v3 = vld [vmem:[%s242_s3] ss:$0 sm:$0xff] }
   0x4   :  { %v69_v5 = vld [vmem:[%s244_s1] sm:$0xff] }
   0x5   :  { %v160_v45 = vld [vmem:[%s245_s4] ss:$0 sm:$0xff] }
   0x6   :  { %62 = vmatpush.bf16.msra.mxu0 %v156_v1  ;;  %v161_v48 = vld [vmem:[%s246_s5] ss:$0 sm:$0xff] }
   0x7   :  { %v163_v15 = vpop.eup %162 }
   0x8   :  { %v80_v16 = vmul.f32 32.0, %v163_v15  ;;  %vm84_vm1 = vweird.f32 %v163_v15 }
   0x9   :  { %154 = vmatmul.msk.bf16.vlgmr.msra.gmra.mxu0 %vm51_vm0, %v155_v2 }
   0xa   :  { %v81_v17 = vsub.f32 1.0, %v80_v16 }
   0xc   :  { %v82_v18 = vmul.f32 %v163_v15, %v81_v17 }
   0xe   :  { %v83_v19 = vadd.f32 %v163_v15, %v82_v18 }
  0x10   :  { %v85_v20 = vsel %vm84_vm1, %v163_v15, %v83_v19 }
  0x86   :  { %v64_v4 = vpop.f32.mrf.mxu0 }
  0x87   :  { %v65_v6 = vadd.f32 %v159_v3, %v64_v4 }
  0x89   :  { %v71_v7 = vadd.f32 %v69_v5, %v65_v6 }
  0x8b   :  { %v73_v8 = vsel %vm51_vm0, %v71_v7, 0.0 }
  0x8c   :  { %74 = vadd.xlane.f32.xlu0 %v73_v8 }
  0x8e   :  { %v66_v9 = vpop.f32.mrf.mxu0 }
  0x8f   :  { %v67_v11 = vadd.f32 %v159_v3, %v66_v9 }
  0x91   :  { %v72_v12 = vadd.f32 %v70_v10, %v67_v11 }
  0x93   :  { %v76_v13 = vsel %vm51_vm0, %v72_v12, 0.0 }
  0x94   :  { %77 = vadd.xlane.f32.xlu0 %v76_v13 }
  0xff   :  { %v75_v21 = vpop.xlane.xlu0 %74 }
 0x100   :  { %v86_v22 = vmul.f32 %v85_v20, %v75_v21 }
 0x102   :  { %v88_v23 = vsub.f32 %v71_v7, %v86_v22 }
 0x104   :  { %v90_v24 = vmul.f32 %v88_v23, %v88_v23 }
 0x106   :  { %v92_v25 = vsel %vm51_vm0, %v90_v24, 0.0 }
 0x107   :  { %93 = vadd.xlane.f32.xlu1 %v92_v25  ;;  %v78_v26 = vpop.xlane.xlu0 %77 }
 0x108   :  { %v87_v27 = vmul.f32 %v85_v20, %v78_v26 }
 0x10a   :  { %v89_v28 = vsub.f32 %v72_v12, %v87_v27 }
 0x10c   :  { %v91_v29 = vmul.f32 %v89_v28, %v89_v28 }
 0x10e   :  { %v95_v30 = vsel %vm51_vm0, %v91_v29, 0.0 }
 0x10f   :  { %96 = vadd.xlane.f32.xlu1 %v95_v30 }
 0x17a   :  { %v94_v31 = vpop.xlane.xlu1 %93 }
 0x17b   :  { %v98_v32 = vmul.f32 %v94_v31, %v85_v20 }
 0x17d   :  { %v100_v33 = vadd.f32 1e-05, %v98_v32 }
 0x17f   :  { %164 = vrsqrt.f32 %v100_v33  ;;  %vm108_vm3 = vweird.f32 %v100_v33 }
 0x182   :  { %v97_v34 = vpop.xlane.xlu1 %96 }
 0x183   :  { %v99_v35 = vmul.f32 %v97_v34, %v85_v20 }
 0x185   :  { %v165_v36 = vpop.eup %164  ;;  %v101_v37 = vadd.f32 1e-05, %v99_v35 }
 0x186   :  { %v103_v38 = vmul.f32 %v165_v36, %v100_v33  ;;  %vm109_vm2 = vweird.f32 %v165_v36 }
 0x187   :  { %166 = vrsqrt.f32 %v101_v37  ;;  %vm110_vm4 = vmor %vm108_vm3, %vm109_vm2  ;;  %vm118_vm6 = vweird.f32 %v101_v37 }
 0x188   :  { %v104_v39 = vmul.f32 %v165_v36, %v103_v38 }
 0x18a   :  { %v105_v40 = vmul.f32 0.5, %v104_v39 }
 0x18c   :  { %v106_v41 = vsub.f32 1.5, %v105_v40 }
 0x18d   :  { %v167_v42 = vpop.eup %166 }
 0x18e   :  { %v107_v43 = vmul.f32 %v165_v36, %v106_v41  ;;  %v113_v44 = vmul.f32 %v167_v42, %v101_v37  ;;  %vm119_vm5 = vweird.f32 %v167_v42 }
 0x18f   :  { %vm120_vm7 = vmor %vm118_vm6, %vm119_vm5 }
 0x190   :  { %v111_v46 = vsel %vm110_vm4, %v165_v36, %v107_v43  ;;  %v114_v47 = vmul.f32 %v167_v42, %v113_v44 }
 0x191   :  { %v122_v49 = vmul.f32 %v111_v46, %v88_v23 }
 0x192   :  { %v115_v50 = vmul.f32 0.5, %v114_v47 }
 0x193   :  { %v128_v51 = vmul.f32 %v160_v45, %v122_v49 }
 0x194   :  { %v116_v52 = vsub.f32 1.5, %v115_v50 }
 0x195   :  { %v134_v53 = vadd.f32 %v161_v48, %v128_v51 }
 0x196   :  { %v117_v54 = vmul.f32 %v167_v42, %v116_v52 }
 0x197   :  { %136 = vst.msk [vmem:[%s247_s6] sm:$0xff] %vm51_vm0, %v134_v53 }
 0x198   :  { %v121_v55 = vsel %vm120_vm7, %v167_v42, %v117_v54 }
 0x199   :  { %v123_v56 = vmul.f32 %v121_v55, %v89_v28 }
 0x19b   :  { %v129_v57 = vmul.f32 %v160_v45, %v123_v56 }
 0x19d   :  { %v135_v58 = vadd.f32 %v161_v48, %v129_v57 }
 0x19f   :  { %137 = vst.msk [vmem:[%s247_s6 + $0x8] sm:$0xff] %vm51_vm0, %v135_v58 }

// kernel: deformable_decoder_layer.9
= control target key start
LH: loop header
LB: loop body
LE: loop exit
PB: predicated region body
PF: predicated region fallthrough
CT: control target
= control target key end

     0   :  { %s373_s0 = inlined_call_operand.vmem [shape: f32[16,32], index: 0, kind: input, shape index: {}]   ;;  %s374_s1 = inlined_call_operand.vmem [shape: bf16[32,64], index: 1, kind: input, shape index: {}]   ;;  %s375_s2 = inlined_call_operand.vmem [shape: f32[1,64], index: 2, kind: input, shape index: {}]   ;;  %s376_s3 = inlined_call_operand.vmem [shape: bf16[64,32], index: 3, kind: input, shape index: {}]   ;;  %s377_s4 = inlined_call_operand.vmem [shape: f32[1,32], index: 4, kind: input, shape index: {}]   ;;  %s378_s5 = inlined_call_operand.vmem [shape: f32[1,32], index: 5, kind: input, shape index: {}]   ;;  %s379_s6 = inlined_call_operand.vmem [shape: f32[1,32], index: 6, kind: input, shape index: {}]   ;;  %s380_s7 = inlined_call_operand.hbm [shape: f32[16,32], index: 7, kind: output, shape index: {}]  }
   0x1   :  { %v238_v0 = vld [vmem:[%s374_s1 + $0x8] sm:$0xff]  ;;  %v237_v1 = vld [vmem:[%s374_s1] sm:$0xff] }
   0x2   :  { %v28_v2 = vld [vmem:[%s373_s0] sm:$0xff]  ;;  %v29_v3 = vld [vmem:[%s373_s0 + $0x8] sm:$0xff]  ;;  %61 = vmatpush.bf16.msra.mxu0 %v238_v0 }
   0x3   :  { %12 = vsyncpa [#allocation3], 0  ;;  %v30_v4 = vpack.c.bf16 %v29_v3, %v28_v2  ;;  %vm51_vm0 = vcmask 261120   ;;  %v242_v5 = vld [vmem:[%s376_s3 + $0x18] sm:$0xff]  ;;  %v241_v6 = vld [vmem:[%s376_s3 + $0x10] sm:$0xff]  ;;  %vm108_vm1 = vcmask 523264  }
   0x4   :  { %116 = vmatpush.bf16.msra.mxu1 %v242_v5  ;;  %v240_v7 = vld [vmem:[%s376_s3 + $0x8] sm:$0xff]  ;;  %v239_v8 = vld [vmem:[%s376_s3] sm:$0xff]  ;;  %v283_v26 = vmov 32.0   ;;  %s199_s23 = sshll.u32 %s380_s7, 4  ;;  %s286_s24 = smov 8   ;;  %s200_s23 = int_to_ptr.hbm [resolvable:$true] %s199_s23 }
   0x5   :  { %v247_v10 = vld [vmem:[%s375_s2] ss:$0 sm:$0xff]  ;;  %251 = vrcp.f32 %v283_v26 }
   0x6   :  { %62 = vmatpush.bf16.msra.mxu0 %v237_v1  ;;  %v248_v17 = vld [vmem:[%s377_s4] ss:$0 sm:$0xff] }
   0x7   :  { %v249_v57 = vld [vmem:[%s378_s5] ss:$0 sm:$0xff]  ;;  %s284_s5 = smov [#allocation2]  }
   0x8   :  { %117 = vmatpush.bf16.msra.mxu1 %v241_v6  ;;  %v250_v61 = vld [vmem:[%s379_s6] ss:$0 sm:$0xff]  ;;  %s197_s20 = sshll.u32 %s284_s5, 4  ;;  %s285_s6 = smov 128   ;;  %s198_s20 = int_to_ptr.vmem [resolvable:$true] %s197_s20 }
   0x9   :  { %219 = vmatmul.msk.bf16.vlgmr.msra.gmra.mxu0 %vm51_vm0, %v30_v4 }
   0xb   :  { %v252_v27 = vpop.eup %251 }
   0xc   :  { %118 = vmatpush.bf16.msra.mxu1 %v240_v7  ;;  %v135_v28 = vmul.f32 32.0, %v252_v27  ;;  %vm139_vm2 = vweird.f32 %v252_v27 }
   0xe   :  { %v136_v29 = vsub.f32 1.0, %v135_v28 }
  0x10   :  { %119 = vmatpush.bf16.msra.mxu1 %v239_v8  ;;  %v137_v30 = vmul.f32 %v252_v27, %v136_v29 }
  0x12   :  { %v138_v31 = vadd.f32 %v252_v27, %v137_v30 }
  0x14   :  { %v140_v32 = vsel %vm139_vm2, %v252_v27, %v138_v31 }
  0x86   :  { %v64_v9 = vpop.f32.mrf.mxu0 }
  0x87   :  { %v65_v11 = vadd.f32 %v247_v10, %v64_v9 }
  0x89   :  { %v69_v14 = vmax.f32 %v65_v11, 0.0 }
  0x8e   :  { %v66_v12 = vpop.f32.mrf.mxu0 }
  0x8f   :  { %v67_v13 = vadd.f32 %v247_v10, %v66_v12 }
  0x91   :  { %v70_v15 = vmax.f32 %v67_v13, 0.0 }
  0x93   :  { %v71_v16 = vpack.c.bf16 %v70_v15, %v69_v14 }
  0x95   :  { %236 = vmatmul.msk.bf16.vlgmr.msra.gmra.mxu1 %vm108_vm1, %v71_v16 }
 0x112   :  { %v121_v18 = vpop.f32.mrf.mxu1 }
 0x113   :  { %v122_v19 = vadd.f32 %v248_v17, %v121_v18 }
 0x115   :  { %v126_v20 = vadd.f32 %v122_v19, %v28_v2 }
 0x117   :  { %v128_v21 = vsel %vm51_vm0, %v126_v20, 0.0 }
 0x118   :  { %129 = vadd.xlane.f32.xlu0 %v128_v21 }
 0x11a   :  { %v123_v22 = vpop.f32.mrf.mxu1 }
 0x11b   :  { %v124_v23 = vadd.f32 %v248_v17, %v123_v22 }
 0x11d   :  { %v127_v24 = vadd.f32 %v124_v23, %v29_v3 }
 0x11f   :  { %v131_v25 = vsel %vm51_vm0, %v127_v24, 0.0 }
 0x120   :  { %132 = vadd.xlane.f32.xlu0 %v131_v25 }
 0x18b   :  { %v130_v33 = vpop.xlane.xlu0 %129 }
 0x18c   :  { %v141_v34 = vmul.f32 %v140_v32, %v130_v33 }
 0x18e   :  { %v143_v35 = vsub.f32 %v126_v20, %v141_v34 }
 0x190   :  { %v145_v36 = vmul.f32 %v143_v35, %v143_v35 }
 0x192   :  { %v147_v37 = vsel %vm51_vm0, %v145_v36, 0.0 }
 0x193   :  { %148 = vadd.xlane.f32.xlu1 %v147_v37  ;;  %v133_v38 = vpop.xlane.xlu0 %132 }
 0x194   :  { %v142_v39 = vmul.f32 %v140_v32, %v133_v38 }
 0x196   :  { %v144_v40 = vsub.f32 %v127_v24, %v142_v39 }
 0x198   :  { %v146_v41 = vmul.f32 %v144_v40, %v144_v40 }
 0x19a   :  { %v150_v42 = vsel %vm51_vm0, %v146_v41, 0.0 }
 0x19b   :  { %151 = vadd.xlane.f32.xlu1 %v150_v42 }
 0x206   :  { %v149_v43 = vpop.xlane.xlu1 %148 }
 0x207   :  { %v153_v44 = vmul.f32 %v149_v43, %v140_v32 }
 0x209   :  { %v155_v45 = vadd.f32 1e-05, %v153_v44 }
 0x20b   :  { %253 = vrsqrt.f32 %v155_v45  ;;  %vm163_vm4 = vweird.f32 %v155_v45 }
 0x20e   :  { %v152_v46 = vpop.xlane.xlu1 %151 }
 0x20f   :  { %v154_v47 = vmul.f32 %v152_v46, %v140_v32 }
 0x211   :  { %v254_v48 = vpop.eup %253  ;;  %v156_v49 = vadd.f32 1e-05, %v154_v47 }
 0x212   :  { %v158_v50 = vmul.f32 %v254_v48, %v155_v45  ;;  %vm164_vm3 = vweird.f32 %v254_v48 }
 0x213   :  { %255 = vrsqrt.f32 %v156_v49  ;;  %vm165_vm5 = vmor %vm163_vm4, %vm164_vm3  ;;  %vm173_vm7 = vweird.f32 %v156_v49 }
 0x214   :  { %v159_v51 = vmul.f32 %v254_v48, %v158_v50 }
 0x216   :  { %v160_v52 = vmul.f32 0.5, %v159_v51 }
 0x218   :  { %v161_v53 = vsub.f32 1.5, %v160_v52 }
 0x219   :  { %v256_v54 = vpop.eup %255 }
 0x21a   :  { %v162_v55 = vmul.f32 %v254_v48, %v161_v53  ;;  %v168_v56 = vmul.f32 %v256_v54, %v156_v49  ;;  %vm174_vm6 = vweird.f32 %v256_v54 }
 0x21b   :  { %vm175_vm8 = vmor %vm173_vm7, %vm174_vm6 }
 0x21c   :  { %v166_v58 = vsel %vm165_vm5, %v254_v48, %v162_v55  ;;  %v169_v59 = vmul.f32 %v256_v54, %v168_v56 }
 0x21d   :  { %v177_v60 = vmul.f32 %v166_v58, %v143_v35 }
 0x21e   :  { %v170_v62 = vmul.f32 0.5, %v169_v59 }
 0x21f   :  { %v183_v63 = vmul.f32 %v249_v57, %v177_v60 }
 0x220   :  { %v171_v0 = vsub.f32 1.5, %v170_v62 }
 0x221   :  { %v189_v1 = vadd.f32 %v250_v61, %v183_v63 }
 0x222   :  { %v172_v2 = vmul.f32 %v256_v54, %v171_v0 }
 0x223   :  { %191 = vst.msk [vmem:[#allocation2] sm:$0xff] %vm51_vm0, %v189_v1 }
 0x224   :  { %v176_v3 = vsel %vm175_vm8, %v256_v54, %v172_v2 }
 0x225   :  { %v178_v4 = vmul.f32 %v176_v3, %v144_v40 }
 0x227   :  { %v184_v5 = vmul.f32 %v249_v57, %v178_v4 }
 0x229   :  { %v190_v6 = vadd.f32 %v250_v61, %v184_v5 }
 0x22b   :  { %192 = vst.msk [vmem:[#allocation2 + $0x8] sm:$0xff] %vm51_vm0, %v190_v6 }
 0x22c   :  { %205 = dma.vmem_to_hbm [thread:$0]  %s198_s20, 256, %s200_s23, [#allocation3], %s285_s6, %s285_s6, %s286_s24  }
 0x22d   :  { %281 = dma.done.wait [#allocation3], 256  }
 0x22e   :  { %282 = vsyncadd [#allocation3], 4294967040 }
 0x22f   :  { %210 = vsyncpa [#allocation3], 1 }

</bundles_post_ra>
